<compile_context>
chip_gen: v7x
topology: tpu7x:2x2x1
jax: 0.10.0
libtpu: 0.0.40
codegen_flags: <defaults>
</compile_context>

<pallas_src>
import math

import jax
import jax.numpy as jnp
from jax.experimental import pallas as pl
from jax.experimental.pallas import tpu as pltpu


# ------------------------------ model dims -----------------------------------
B = 2            # batch
S_ENC = 8        # encoder sequence length
S_DEC = 8        # decoder sequence length
D_MODEL = 32     # d_model
N_HEADS = 4
D_HEAD = 8
D_INNER = N_HEADS * D_HEAD          # 32
D_FF = 64
NUM_LABELS = 16                     # vocab after resize_token_embeddings(num_labels)
V_PAD = 128                         # vocab padded to one full lane tile
NUM_BUCKETS = 32
MAX_DISTANCE = 128
EPS = 1e-6
NEG_INF = -1e9


# ---------------- in-kernel building blocks (operate on VMEM values) ----------
def _rmsnorm(x, w):
    """T5LayerNorm (RMSNorm, no mean subtraction, no bias). x: [N, D], w: [1, D]."""
    var = jnp.mean(x * x, axis=-1, keepdims=True)
    return w * (x * jax.lax.rsqrt(var + EPS))


def _ffn(x, wi, wo):
    """T5 DenseReluDense: relu(x @ wi) @ wo."""
    h = jnp.maximum(jnp.dot(x, wi, preferred_element_type=jnp.float32), 0.0)
    return jnp.dot(h, wo, preferred_element_type=jnp.float32)


def _attend(q_src, kv_src, wq, wk, wv, wo, bias, head_mask, seg_sum, sq, sk):
    """All-heads attention with a head-block-diagonal K/V (no per-head loop,
    no intra-lane-tile slicing).

      q_src:  [B*sq, D]      kv_src: [B*sk, D]
      wq/wk/wv: [D, D_INNER] wo: [D_INNER, D]
      bias: [B, sq, H*sk]    additive (relative-position bias + masks, folded
                             in the wrapper)
      head_mask: [H*sk, D_INNER]  head_mask[f, e] = 1 iff f//sk == e//D_HEAD
      seg_sum:   [H*sk, H*sk]     seg_sum[f, g]  = 1 iff f//sk == g//sk

    Returns [B*sq, D].  NOTE: no 1/sqrt(d_head) scaling (T5 convention: the
    scale is folded into the weight init) -- do not "fix" this.
    """
    f = N_HEADS * sk
    # Three separate full-width lane-dense projections (no fused-QKV slicing).
    q = jnp.dot(q_src, wq, preferred_element_type=jnp.float32)       # [B*sq, DI]
    k = jnp.dot(kv_src, wk, preferred_element_type=jnp.float32)      # [B*sk, DI]
    v = jnp.dot(kv_src, wv, preferred_element_type=jnp.float32)      # [B*sk, DI]
    q3 = q.reshape(B, sq, D_INNER)
    k3 = k.reshape(B, sk, D_INNER)
    v3 = v.reshape(B, sk, D_INNER)

    # Head-block-diagonal K / V: kb[b, h*sk + j, e] = k3[b, j, e] * (e in head h).
    kb = jnp.concatenate([k3] * N_HEADS, axis=1) * head_mask[None, :, :]
    vb = jnp.concatenate([v3] * N_HEADS, axis=1) * head_mask[None, :, :]

    # Scores for ALL heads in one 3-D einsum: [B, sq, H*sk].
    s = jnp.einsum('bqe,bfe->bqf', q3, kb, preferred_element_type=jnp.float32)
    s = s + bias

    # Per-head softmax: the row max over all heads is an exact (shift-invariant)
    # stabilizer; per-head denominators are recovered with one segment-sum matmul.
    m = jnp.max(s, axis=-1, keepdims=True)
    p = jnp.exp(s - m)                                                # [B, sq, f]
    p2 = p.reshape(B * sq, f)
    denom = jnp.dot(p2, seg_sum, preferred_element_type=jnp.float32)  # [B*sq, f]
    denom = jnp.maximum(denom, 1e-30)     # guard fully-masked segments (0/0)
    p = (p2 / denom).reshape(B, sq, f)    # exact division (no approx reciprocal)

    # probs @ V for all heads at once -> already in concat-by-head layout.
    o = jnp.einsum('bqf,bfe->bqe', p, vb, preferred_element_type=jnp.float32)
    return jnp.dot(o.reshape(B * sq, D_INNER), wo,
                   preferred_element_type=jnp.float32)


# ------------------------------ fused forward kernel --------------------------
def _t5_fused_kernel(
        # activations / labels / combined biases / static head masks
        enc_x_ref, dec_x_ref, labels_ref,
        bias_enc_ref, bias_dec_ref, bias_cross_ref, head_mask_ref, seg_sum_ref,
        # encoder weights
        e_wq_ref, e_wk_ref, e_wv_ref, e_wo_ref,
        e_ln1_ref, e_ln2_ref, e_lnf_ref, e_wi_ref, e_wff_ref,
        # decoder weights
        d_swq_ref, d_swk_ref, d_swv_ref, d_swo_ref,
        d_cwq_ref, d_cwk_ref, d_cwv_ref, d_cwo_ref,
        d_ln1_ref, d_ln2_ref, d_ln3_ref, d_lnf_ref, d_wi_ref, d_wff_ref,
        # lm head (pre-transposed, pre-scaled, lane-padded to 128)
        lm_ref,
        # outputs
        logits_ref, loss_ref):
    head_mask = head_mask_ref[...]
    seg_sum = seg_sum_ref[...]

    # ---------------- encoder layer ----------------
    h = enc_x_ref[...]                                          # [B*Se, D]
    ln = _rmsnorm(h, e_ln1_ref[...])
    h = h + _attend(ln, ln, e_wq_ref[...], e_wk_ref[...], e_wv_ref[...],
                    e_wo_ref[...], bias_enc_ref[...], head_mask, seg_sum,
                    S_ENC, S_ENC)
    ln = _rmsnorm(h, e_ln2_ref[...])
    h = h + _ffn(ln, e_wi_ref[...], e_wff_ref[...])
    enc_out = _rmsnorm(h, e_lnf_ref[...])                       # [B*Se, D]

    # ---------------- decoder layer ----------------
    h = dec_x_ref[...]                                          # [B*Sd, D]
    ln = _rmsnorm(h, d_ln1_ref[...])
    h = h + _attend(ln, ln, d_swq_ref[...], d_swk_ref[...], d_swv_ref[...],
                    d_swo_ref[...], bias_dec_ref[...], head_mask, seg_sum,
                    S_DEC, S_DEC)
    ln = _rmsnorm(h, d_ln2_ref[...])
    h = h + _attend(ln, enc_out, d_cwq_ref[...], d_cwk_ref[...], d_cwv_ref[...],
                    d_cwo_ref[...], bias_cross_ref[...], head_mask, seg_sum,
                    S_DEC, S_ENC)
    ln = _rmsnorm(h, d_ln3_ref[...])
    h = h + _ffn(ln, d_wi_ref[...], d_wff_ref[...])
    dec_out = _rmsnorm(h, d_lnf_ref[...])                       # [B*Sd, D]

    # -------- LM head (lane-dense, vocab padded to 128) + masked CE --------
    logits = jnp.dot(dec_out, lm_ref[...],
                     preferred_element_type=jnp.float32)        # [B*Sd, 128]
    logits_ref[...] = logits                                    # unmasked vst

    lb = labels_ref[...]                                        # [N, 1] int32
    colv = jax.lax.broadcasted_iota(jnp.int32, logits.shape, 1)
    # Pad columns (>= NUM_LABELS) must not contribute to the LSE.
    logits_lse = jnp.where(colv < NUM_LABELS, logits, NEG_INF)
    m = jnp.max(logits_lse, axis=-1, keepdims=True)
    lse = m + jnp.log(jnp.sum(jnp.exp(logits_lse - m), axis=-1, keepdims=True))
    onehot = (colv == lb).astype(jnp.float32)                   # -100 never matches
    tgt = jnp.sum(onehot * logits, axis=-1, keepdims=True)
    valid = (lb != -100).astype(jnp.float32)
    s = jnp.sum((lse - tgt) * valid, axis=(0, 1), keepdims=True)    # [1, 1]
    c = jnp.sum(valid, axis=(0, 1), keepdims=True)                  # [1, 1]
    loss = jnp.where(c > 0.0, s / jnp.maximum(c, 1.0), jnp.zeros_like(s))
    # Lane-dense (unmasked) store of the scalar loss.
    loss_ref[...] = jnp.broadcast_to(loss, (1, V_PAD))


# ------------------------------ T5 glue (plain JAX) ---------------------------
def relative_position_bucket(rp, bidirectional):
    num_buckets = NUM_BUCKETS
    buckets = jnp.zeros_like(rp)
    if bidirectional:
        num_buckets //= 2
        buckets = buckets + (rp > 0).astype(jnp.int32) * num_buckets
        rp = jnp.abs(rp)
    else:
        rp = -jnp.minimum(rp, 0)
    max_exact = num_buckets // 2
    is_small = rp < max_exact
    rp_f = jnp.maximum(rp.astype(jnp.float32), 1.0)
    rp_large = max_exact + (
        jnp.log(rp_f / max_exact)
        / math.log(MAX_DISTANCE / max_exact)
        * (num_buckets - max_exact)
    ).astype(jnp.int32)
    rp_large = jnp.minimum(rp_large, num_buckets - 1)
    return buckets + jnp.where(is_small, rp, rp_large)


def compute_position_bias(sq, sk, table, bidirectional):
    """Relative-position bias lookup. Returns [H, Sq, Sk] (tiny gather; XLA)."""
    ctx = jnp.arange(sq)[:, None]
    mem = jnp.arange(sk)[None, :]
    buckets = relative_position_bucket(mem - ctx, bidirectional)
    values = table[buckets]                       # [Sq, Sk, H]
    return jnp.transpose(values, (2, 0, 1))       # [H, Sq, Sk]


def decoder_forward(params, inputs_embeds, attention_mask,
                    decoder_inputs_embeds, decoder_attention_mask, labels):
    b, se, d = inputs_embeds.shape
    sd = decoder_inputs_embeds.shape[1]

    enc = params["enc"]
    dec = params["dec"]

    # ---- combined additive biases (pos-bias + masks), heads along lanes ----
    pos_enc = compute_position_bias(se, se, enc["rel_bias"], bidirectional=True)
    pos_dec = compute_position_bias(sd, sd, dec["rel_bias"], bidirectional=False)

    att_f = attention_mask.astype(jnp.float32)                       # [B, Se]
    dec_f = decoder_attention_mask.astype(jnp.float32)               # [B, Sd]
    neg_e = (1.0 - att_f) * NEG_INF                                  # [B, Se]
    neg_e_l = jnp.tile(neg_e, (1, N_HEADS))                          # [B, H*Se]

    pe = jnp.transpose(pos_enc, (1, 0, 2)).reshape(se, N_HEADS * se)
    bias_enc = pe[None, :, :] + neg_e_l[:, None, :]                  # [B, Se, H*Se]

    causal = (jnp.arange(sd)[None, :] <= jnp.arange(sd)[:, None]).astype(jnp.float32)
    comb = causal[None, :, :] * dec_f[:, None, :]                    # [B, Sd, Sd]
    neg_d = (1.0 - comb) * NEG_INF
    pd = jnp.transpose(pos_dec, (1, 0, 2)).reshape(sd, N_HEADS * sd)
    bias_dec = pd[None, :, :] + jnp.tile(neg_d, (1, 1, N_HEADS))     # [B, Sd, H*Sd]

    # Cross attention: encoder padding mask only (T5 has no cross pos-bias).
    bias_cross = jnp.broadcast_to(neg_e_l[:, None, :], (b, sd, N_HEADS * se))

    # ---- static head-block masks (constant-folded under jit; S_ENC == S_DEC) ----
    f_idx = jnp.arange(N_HEADS * se)
    head_mask = (f_idx[:, None] // se == jnp.arange(D_INNER)[None, :] // D_HEAD
                 ).astype(jnp.float32)                               # [H*S, DI]
    seg_sum = (f_idx[:, None] // se == f_idx[None, :] // se
               ).astype(jnp.float32)                                 # [H*S, H*S]

    args = (
        inputs_embeds.reshape(b * se, d),
        decoder_inputs_embeds.reshape(b * sd, d),
        labels.reshape(b * sd, 1).astype(jnp.int32),
        bias_enc, bias_dec, bias_cross, head_mask, seg_sum,
        enc["attn"]["wq"], enc["attn"]["wk"], enc["attn"]["wv"], enc["attn"]["wo"],
        enc["ln1"].reshape(1, d), enc["ln2"].reshape(1, d),
        enc["ln_f"].reshape(1, d),
        enc["wi"], enc["wo_ff"],
        dec["self_attn"]["wq"], dec["self_attn"]["wk"],
        dec["self_attn"]["wv"], dec["self_attn"]["wo"],
        dec["cross_attn"]["wq"], dec["cross_attn"]["wk"],
        dec["cross_attn"]["wv"], dec["cross_attn"]["wo"],
        dec["ln1"].reshape(1, d), dec["ln2"].reshape(1, d),
        dec["ln3"].reshape(1, d), dec["ln_f"].reshape(1, d),
        dec["wi"], dec["wo_ff"],
        params["lm_head"],                        # [D, 128] pre-scaled at init
    )

    # ---- advisory cost estimate (rough, static) ----
    def _mm(m, k, n):
        return 2 * m * k * n
    n_tok = b * sd
    f_att = N_HEADS * se
    attn_flops = (4 * _mm(n_tok, D_MODEL, D_INNER)
                  + 2 * _mm(n_tok, D_INNER, f_att)
                  + _mm(n_tok, f_att, f_att))
    ffn_flops = _mm(n_tok, D_MODEL, D_FF) + _mm(n_tok, D_FF, D_MODEL)
    flops = int(3 * attn_flops + 2 * ffn_flops + _mm(n_tok, D_MODEL, V_PAD))
    transcendentals = int(3 * n_tok * f_att + n_tok * (V_PAD + 1) + 8 * n_tok)
    bytes_accessed = int(sum(a.size * a.dtype.itemsize for a in args)
                         + 4 * (n_tok * V_PAD + V_PAD))

    vmem_spec = pl.BlockSpec(memory_space=pltpu.MemorySpace.VMEM)

    logits_pad, loss = pl.pallas_call(
        _t5_fused_kernel,
        out_shape=(jax.ShapeDtypeStruct((b * sd, V_PAD), jnp.float32),
                   jax.ShapeDtypeStruct((1, V_PAD), jnp.float32)),
        in_specs=[vmem_spec] * len(args),
        out_specs=(vmem_spec, vmem_spec),
        compiler_params=pltpu.CompilerParams(
            vmem_limit_bytes=32 * 1024 * 1024),
        cost_estimate=pl.CostEstimate(flops=flops,
                                      transcendentals=transcendentals,
                                      bytes_accessed=bytes_accessed),
    )(*args)

    return {"loss": loss[0, 0],
            "logits": logits_pad[:, :NUM_LABELS].reshape(b, sd, NUM_LABELS)}


# ------------------------------ parameter init --------------------------------
def init_params(key):
    keys = iter(jax.random.split(key, 64))

    def w(shape, scale=0.02):
        return jax.random.normal(next(keys), shape, jnp.float32) * scale

    def attn_params():
        return {"wq": w((D_MODEL, D_INNER)), "wk": w((D_MODEL, D_INNER)),
                "wv": w((D_MODEL, D_INNER)), "wo": w((D_INNER, D_MODEL))}

    ones = jnp.ones((D_MODEL,), jnp.float32)
    shared = w((NUM_LABELS, D_MODEL))
    # LM head hoisted out of the forward path: pre-transposed, tied-embedding
    # rescale (d_model ** -0.5) pre-applied, zero-padded to a 128-lane tile.
    lm_head = jnp.zeros((D_MODEL, V_PAD), jnp.float32)
    lm_head = lm_head.at[:, :NUM_LABELS].set(shared.T * (D_MODEL ** -0.5))

    return {
        "lm_head": lm_head,
        "enc": {
            "attn": attn_params(),
            "rel_bias": w((NUM_BUCKETS, N_HEADS)),
            "ln1": ones, "ln2": ones, "ln_f": ones,
            "wi": w((D_MODEL, D_FF)), "wo_ff": w((D_FF, D_MODEL)),
        },
        "dec": {
            "self_attn": attn_params(),
            "cross_attn": attn_params(),
            "rel_bias": w((NUM_BUCKETS, N_HEADS)),
            "ln1": ones, "ln2": ones, "ln3": ones, "ln_f": ones,
            "wi": w((D_MODEL, D_FF)), "wo_ff": w((D_FF, D_MODEL)),
        },
    }


# ------------------------------ main -------------------------------------------
if __name__ == "__main__":
    root = jax.random.PRNGKey(0)
    k_par, k_in, k_dec, k_lab = jax.random.split(root, 4)

    params = init_params(k_par)

    inputs_embeds = jax.random.normal(k_in, (B, S_ENC, D_MODEL), jnp.float32)
    attention_mask = jnp.array([[1] * S_ENC,
                                [1] * (S_ENC - 2) + [0] * 2], jnp.float32)
    decoder_inputs_embeds = jax.random.normal(k_dec, (B, S_DEC, D_MODEL), jnp.float32)
    decoder_attention_mask = jnp.ones((B, S_DEC), jnp.float32)
    labels = jax.random.randint(k_lab, (B, S_DEC), 0, NUM_LABELS, jnp.int32)
    labels = labels.at[1, 6:].set(-100)   # padded label positions (ignore_index)

    fwd = jax.jit(decoder_forward)
    out = fwd(params, inputs_embeds, attention_mask,
              decoder_inputs_embeds, decoder_attention_mask, labels)
    jax.block_until_ready(out)

    assert out["logits"].shape == (B, S_DEC, NUM_LABELS)
    assert jnp.isfinite(out["loss"])
    print("KERNEL_OK")
</pallas_src>

<mosaic_0001>
module attributes {stable_mosaic.version = 11 : i64} {
  func.func @_t5_fused_kernel(%arg0: memref<16x32xf32, #tpu.memory_space<vmem>>, %arg1: memref<16x32xf32, #tpu.memory_space<vmem>>, %arg2: memref<16x1xi32, #tpu.memory_space<vmem>>, %arg3: memref<2x8x32xf32, #tpu.memory_space<vmem>>, %arg4: memref<2x8x32xf32, #tpu.memory_space<vmem>>, %arg5: memref<2x8x32xf32, #tpu.memory_space<vmem>>, %arg6: memref<32x32xf32, #tpu.memory_space<vmem>>, %arg7: memref<32x32xf32, #tpu.memory_space<vmem>>, %arg8: memref<32x32xf32, #tpu.memory_space<vmem>>, %arg9: memref<32x32xf32, #tpu.memory_space<vmem>>, %arg10: memref<32x32xf32, #tpu.memory_space<vmem>>, %arg11: memref<32x32xf32, #tpu.memory_space<vmem>>, %arg12: memref<1x32xf32, #tpu.memory_space<vmem>>, %arg13: memref<1x32xf32, #tpu.memory_space<vmem>>, %arg14: memref<1x32xf32, #tpu.memory_space<vmem>>, %arg15: memref<32x64xf32, #tpu.memory_space<vmem>>, %arg16: memref<64x32xf32, #tpu.memory_space<vmem>>, %arg17: memref<32x32xf32, #tpu.memory_space<vmem>>, %arg18: memref<32x32xf32, #tpu.memory_space<vmem>>, %arg19: memref<32x32xf32, #tpu.memory_space<vmem>>, %arg20: memref<32x32xf32, #tpu.memory_space<vmem>>, %arg21: memref<32x32xf32, #tpu.memory_space<vmem>>, %arg22: memref<32x32xf32, #tpu.memory_space<vmem>>, %arg23: memref<32x32xf32, #tpu.memory_space<vmem>>, %arg24: memref<32x32xf32, #tpu.memory_space<vmem>>, %arg25: memref<1x32xf32, #tpu.memory_space<vmem>>, %arg26: memref<1x32xf32, #tpu.memory_space<vmem>>, %arg27: memref<1x32xf32, #tpu.memory_space<vmem>>, %arg28: memref<1x32xf32, #tpu.memory_space<vmem>>, %arg29: memref<32x64xf32, #tpu.memory_space<vmem>>, %arg30: memref<64x32xf32, #tpu.memory_space<vmem>>, %arg31: memref<32x128xf32, #tpu.memory_space<vmem>>, %arg32: memref<16x128xf32, #tpu.memory_space<vmem>>, %arg33: memref<1x128xf32, #tpu.memory_space<vmem>>) attributes {dimension_semantics = [], scalar_prefetch = 0 : i64, scratch_operands = 0 : i64, tpu.core_type = #tpu.core_type<tc>} {
    %c0 = arith.constant 0 : index
    %c0_0 = arith.constant 0 : index
    %0 = vector.load %arg6[%c0, %c0_0] : memref<32x32xf32, #tpu.memory_space<vmem>>, vector<32x32xf32>
    %c0_1 = arith.constant 0 : index
    %c0_2 = arith.constant 0 : index
    %1 = vector.load %arg7[%c0_1, %c0_2] : memref<32x32xf32, #tpu.memory_space<vmem>>, vector<32x32xf32>
    %c0_3 = arith.constant 0 : index
    %c0_4 = arith.constant 0 : index
    %2 = vector.load %arg0[%c0_3, %c0_4] : memref<16x32xf32, #tpu.memory_space<vmem>>, vector<16x32xf32>
    %c0_5 = arith.constant 0 : index
    %c0_6 = arith.constant 0 : index
    %3 = vector.load %arg12[%c0_5, %c0_6] : memref<1x32xf32, #tpu.memory_space<vmem>>, vector<1x32xf32>
    %4 = arith.mulf %2, %2 : vector<16x32xf32>
    %cst = arith.constant dense<0.000000e+00> : vector<16xf32>
    %5 = vector.multi_reduction <add>, %4, %cst [1] : vector<16x32xf32> to vector<16xf32>
    %6 = vector.shape_cast %5 : vector<16xf32> to vector<16x1xf32>
    %cst_7 = arith.constant 3.200000e+01 : f32
    %7 = vector.broadcast %cst_7 : f32 to vector<16x1xf32>
    %8 = arith.divf %6, %7 : vector<16x1xf32>
    %cst_8 = arith.constant 9.99999997E-7 : f32
    %9 = vector.broadcast %cst_8 : f32 to vector<16x1xf32>
    %10 = arith.addf %8, %9 : vector<16x1xf32>
    %11 = math.rsqrt %10 : vector<16x1xf32>
    %12 = vector.broadcast %11 : vector<16x1xf32> to vector<16x32xf32>
    %13 = arith.mulf %2, %12 : vector<16x32xf32>
    %14 = vector.broadcast %3 : vector<1x32xf32> to vector<16x32xf32>
    %15 = arith.mulf %14, %13 : vector<16x32xf32>
    %c0_9 = arith.constant 0 : index
    %c0_10 = arith.constant 0 : index
    %16 = vector.load %arg8[%c0_9, %c0_10] : memref<32x32xf32, #tpu.memory_space<vmem>>, vector<32x32xf32>
    %c0_11 = arith.constant 0 : index
    %c0_12 = arith.constant 0 : index
    %17 = vector.load %arg9[%c0_11, %c0_12] : memref<32x32xf32, #tpu.memory_space<vmem>>, vector<32x32xf32>
    %c0_13 = arith.constant 0 : index
    %c0_14 = arith.constant 0 : index
    %18 = vector.load %arg10[%c0_13, %c0_14] : memref<32x32xf32, #tpu.memory_space<vmem>>, vector<32x32xf32>
    %c0_15 = arith.constant 0 : index
    %c0_16 = arith.constant 0 : index
    %19 = vector.load %arg11[%c0_15, %c0_16] : memref<32x32xf32, #tpu.memory_space<vmem>>, vector<32x32xf32>
    %c0_17 = arith.constant 0 : index
    %c0_18 = arith.constant 0 : index
    %c0_19 = arith.constant 0 : index
    %20 = vector.load %arg3[%c0_17, %c0_18, %c0_19] : memref<2x8x32xf32, #tpu.memory_space<vmem>>, vector<2x8x32xf32>
    %cst_20 = arith.constant dense<0.000000e+00> : vector<16x32xf32>
    %21 = tpu.matmul %15, %16, %cst_20 {dimension_numbers = #tpu.dot_dimension_numbers<[1], [0], [0], [1], [0, 0, 1, 1], [], []>} : vector<16x32xf32>, vector<32x32xf32>, vector<16x32xf32> -> vector<16x32xf32>
    %cst_21 = arith.constant dense<0.000000e+00> : vector<16x32xf32>
    %22 = tpu.matmul %15, %17, %cst_21 {dimension_numbers = #tpu.dot_dimension_numbers<[1], [0], [0], [1], [0, 0, 1, 1], [], []>} : vector<16x32xf32>, vector<32x32xf32>, vector<16x32xf32> -> vector<16x32xf32>
    %cst_22 = arith.constant dense<0.000000e+00> : vector<16x32xf32>
    %23 = tpu.matmul %15, %18, %cst_22 {dimension_numbers = #tpu.dot_dimension_numbers<[1], [0], [0], [1], [0, 0, 1, 1], [], []>} : vector<16x32xf32>, vector<32x32xf32>, vector<16x32xf32> -> vector<16x32xf32>
    %24 = vector.shape_cast %21 : vector<16x32xf32> to vector<2x8x32xf32>
    %25 = vector.shape_cast %22 : vector<16x32xf32> to vector<2x8x32xf32>
    %26 = vector.shape_cast %23 : vector<16x32xf32> to vector<2x8x32xf32>
    %27 = tpu.concatenate %25, %25, %25, %25 in 1 : vector<2x8x32xf32>, vector<2x8x32xf32>, vector<2x8x32xf32>, vector<2x8x32xf32> -> vector<2x32x32xf32>
    %28 = vector.shape_cast %0 : vector<32x32xf32> to vector<1x32x32xf32>
    %29 = vector.broadcast %28 : vector<1x32x32xf32> to vector<2x32x32xf32>
    %30 = arith.mulf %27, %29 : vector<2x32x32xf32>
    %31 = tpu.concatenate %26, %26, %26, %26 in 1 : vector<2x8x32xf32>, vector<2x8x32xf32>, vector<2x8x32xf32>, vector<2x8x32xf32> -> vector<2x32x32xf32>
    %32 = vector.shape_cast %0 : vector<32x32xf32> to vector<1x32x32xf32>
    %33 = vector.broadcast %32 : vector<1x32x32xf32> to vector<2x32x32xf32>
    %34 = arith.mulf %31, %33 : vector<2x32x32xf32>
    "tpu.trace_start"() <{level = 10 : i32, message = "bqe,bfe->bqf"}> : () -> ()
    %cst_23 = arith.constant dense<0.000000e+00> : vector<2x8x32xf32>
    %35 = tpu.matmul %24, %30, %cst_23 {dimension_numbers = #tpu.dot_dimension_numbers<[2], [2], [1], [1], [0, 0, 0, 1, 1, 1], [0], [0]>} : vector<2x8x32xf32>, vector<2x32x32xf32>, vector<2x8x32xf32> -> vector<2x8x32xf32>
    "tpu.trace_stop"() : () -> ()
    %36 = arith.addf %35, %20 : vector<2x8x32xf32>
    %cst_24 = arith.constant dense<0xFF800000> : vector<2x8xf32>
    %37 = vector.multi_reduction <maximumf>, %36, %cst_24 [2] : vector<2x8x32xf32> to vector<2x8xf32>
    %38 = vector.shape_cast %37 : vector<2x8xf32> to vector<2x8x1xf32>
    %39 = vector.broadcast %38 : vector<2x8x1xf32> to vector<2x8x32xf32>
    %40 = arith.subf %36, %39 : vector<2x8x32xf32>
    %41 = math.exp %40 : vector<2x8x32xf32>
    %42 = vector.shape_cast %41 : vector<2x8x32xf32> to vector<16x32xf32>
    %cst_25 = arith.constant dense<0.000000e+00> : vector<16x32xf32>
    %43 = tpu.matmul %42, %1, %cst_25 {dimension_numbers = #tpu.dot_dimension_numbers<[1], [0], [0], [1], [0, 0, 1, 1], [], []>} : vector<16x32xf32>, vector<32x32xf32>, vector<16x32xf32> -> vector<16x32xf32>
    %cst_26 = arith.constant 1.000000e-30 : f32
    %44 = vector.broadcast %cst_26 : f32 to vector<16x32xf32>
    %45 = arith.maximumf %43, %44 : vector<16x32xf32>
    %46 = arith.divf %42, %45 : vector<16x32xf32>
    %47 = vector.shape_cast %46 : vector<16x32xf32> to vector<2x8x32xf32>
    "tpu.trace_start"() <{level = 10 : i32, message = "bqf,bfe->bqe"}> : () -> ()
    %cst_27 = arith.constant dense<0.000000e+00> : vector<2x8x32xf32>
    %48 = tpu.matmul %47, %34, %cst_27 {dimension_numbers = #tpu.dot_dimension_numbers<[2], [1], [1], [2], [0, 0, 0, 1, 1, 2], [0], [0]>} : vector<2x8x32xf32>, vector<2x32x32xf32>, vector<2x8x32xf32> -> vector<2x8x32xf32>
    "tpu.trace_stop"() : () -> ()
    %49 = vector.shape_cast %48 : vector<2x8x32xf32> to vector<16x32xf32>
    %cst_28 = arith.constant dense<0.000000e+00> : vector<16x32xf32>
    %50 = tpu.matmul %49, %19, %cst_28 {dimension_numbers = #tpu.dot_dimension_numbers<[1], [0], [0], [1], [0, 0, 1, 1], [], []>} : vector<16x32xf32>, vector<32x32xf32>, vector<16x32xf32> -> vector<16x32xf32>
    %51 = arith.addf %2, %50 : vector<16x32xf32>
    %c0_29 = arith.constant 0 : index
    %c0_30 = arith.constant 0 : index
    %52 = vector.load %arg13[%c0_29, %c0_30] : memref<1x32xf32, #tpu.memory_space<vmem>>, vector<1x32xf32>
    %53 = arith.mulf %51, %51 : vector<16x32xf32>
    %cst_31 = arith.constant dense<0.000000e+00> : vector<16xf32>
    %54 = vector.multi_reduction <add>, %53, %cst_31 [1] : vector<16x32xf32> to vector<16xf32>
    %55 = vector.shape_cast %54 : vector<16xf32> to vector<16x1xf32>
    %cst_32 = arith.constant 3.200000e+01 : f32
    %56 = vector.broadcast %cst_32 : f32 to vector<16x1xf32>
    %57 = arith.divf %55, %56 : vector<16x1xf32>
    %cst_33 = arith.constant 9.99999997E-7 : f32
    %58 = vector.broadcast %cst_33 : f32 to vector<16x1xf32>
    %59 = arith.addf %57, %58 : vector<16x1xf32>
    %60 = math.rsqrt %59 : vector<16x1xf32>
    %61 = vector.broadcast %60 : vector<16x1xf32> to vector<16x32xf32>
    %62 = arith.mulf %51, %61 : vector<16x32xf32>
    %63 = vector.broadcast %52 : vector<1x32xf32> to vector<16x32xf32>
    %64 = arith.mulf %63, %62 : vector<16x32xf32>
    %c0_34 = arith.constant 0 : index
    %c0_35 = arith.constant 0 : index
    %65 = vector.load %arg15[%c0_34, %c0_35] : memref<32x64xf32, #tpu.memory_space<vmem>>, vector<32x64xf32>
    %c0_36 = arith.constant 0 : index
    %c0_37 = arith.constant 0 : index
    %66 = vector.load %arg16[%c0_36, %c0_37] : memref<64x32xf32, #tpu.memory_space<vmem>>, vector<64x32xf32>
    %cst_38 = arith.constant dense<0.000000e+00> : vector<16x64xf32>
    %67 = tpu.matmul %64, %65, %cst_38 {dimension_numbers = #tpu.dot_dimension_numbers<[1], [0], [0], [1], [0, 0, 1, 1], [], []>} : vector<16x32xf32>, vector<32x64xf32>, vector<16x64xf32> -> vector<16x64xf32>
    %cst_39 = arith.constant 0.000000e+00 : f32
    %68 = vector.broadcast %cst_39 : f32 to vector<16x64xf32>
    %69 = arith.maximumf %67, %68 : vector<16x64xf32>
    %cst_40 = arith.constant dense<0.000000e+00> : vector<16x32xf32>
    %70 = tpu.matmul %69, %66, %cst_40 {dimension_numbers = #tpu.dot_dimension_numbers<[1], [0], [0], [1], [0, 0, 1, 1], [], []>} : vector<16x64xf32>, vector<64x32xf32>, vector<16x32xf32> -> vector<16x32xf32>
    %71 = arith.addf %51, %70 : vector<16x32xf32>
    %c0_41 = arith.constant 0 : index
    %c0_42 = arith.constant 0 : index
    %72 = vector.load %arg14[%c0_41, %c0_42] : memref<1x32xf32, #tpu.memory_space<vmem>>, vector<1x32xf32>
    %73 = arith.mulf %71, %71 : vector<16x32xf32>
    %cst_43 = arith.constant dense<0.000000e+00> : vector<16xf32>
    %74 = vector.multi_reduction <add>, %73, %cst_43 [1] : vector<16x32xf32> to vector<16xf32>
    %75 = vector.shape_cast %74 : vector<16xf32> to vector<16x1xf32>
    %cst_44 = arith.constant 3.200000e+01 : f32
    %76 = vector.broadcast %cst_44 : f32 to vector<16x1xf32>
    %77 = arith.divf %75, %76 : vector<16x1xf32>
    %cst_45 = arith.constant 9.99999997E-7 : f32
    %78 = vector.broadcast %cst_45 : f32 to vector<16x1xf32>
    %79 = arith.addf %77, %78 : vector<16x1xf32>
    %80 = math.rsqrt %79 : vector<16x1xf32>
    %81 = vector.broadcast %80 : vector<16x1xf32> to vector<16x32xf32>
    %82 = arith.mulf %71, %81 : vector<16x32xf32>
    %83 = vector.broadcast %72 : vector<1x32xf32> to vector<16x32xf32>
    %84 = arith.mulf %83, %82 : vector<16x32xf32>
    %c0_46 = arith.constant 0 : index
    %c0_47 = arith.constant 0 : index
    %85 = vector.load %arg1[%c0_46, %c0_47] : memref<16x32xf32, #tpu.memory_space<vmem>>, vector<16x32xf32>
    %c0_48 = arith.constant 0 : index
    %c0_49 = arith.constant 0 : index
    %86 = vector.load %arg25[%c0_48, %c0_49] : memref<1x32xf32, #tpu.memory_space<vmem>>, vector<1x32xf32>
    %87 = arith.mulf %85, %85 : vector<16x32xf32>
    %cst_50 = arith.constant dense<0.000000e+00> : vector<16xf32>
    %88 = vector.multi_reduction <add>, %87, %cst_50 [1] : vector<16x32xf32> to vector<16xf32>
    %89 = vector.shape_cast %88 : vector<16xf32> to vector<16x1xf32>
    %cst_51 = arith.constant 3.200000e+01 : f32
    %90 = vector.broadcast %cst_51 : f32 to vector<16x1xf32>
    %91 = arith.divf %89, %90 : vector<16x1xf32>
    %cst_52 = arith.constant 9.99999997E-7 : f32
    %92 = vector.broadcast %cst_52 : f32 to vector<16x1xf32>
    %93 = arith.addf %91, %92 : vector<16x1xf32>
    %94 = math.rsqrt %93 : vector<16x1xf32>
    %95 = vector.broadcast %94 : vector<16x1xf32> to vector<16x32xf32>
    %96 = arith.mulf %85, %95 : vector<16x32xf32>
    %97 = vector.broadcast %86 : vector<1x32xf32> to vector<16x32xf32>
    %98 = arith.mulf %97, %96 : vector<16x32xf32>
    %c0_53 = arith.constant 0 : index
    %c0_54 = arith.constant 0 : index
    %99 = vector.load %arg17[%c0_53, %c0_54] : memref<32x32xf32, #tpu.memory_space<vmem>>, vector<32x32xf32>
    %c0_55 = arith.constant 0 : index
    %c0_56 = arith.constant 0 : index
    %100 = vector.load %arg18[%c0_55, %c0_56] : memref<32x32xf32, #tpu.memory_space<vmem>>, vector<32x32xf32>
    %c0_57 = arith.constant 0 : index
    %c0_58 = arith.constant 0 : index
    %101 = vector.load %arg19[%c0_57, %c0_58] : memref<32x32xf32, #tpu.memory_space<vmem>>, vector<32x32xf32>
    %c0_59 = arith.constant 0 : index
    %c0_60 = arith.constant 0 : index
    %102 = vector.load %arg20[%c0_59, %c0_60] : memref<32x32xf32, #tpu.memory_space<vmem>>, vector<32x32xf32>
    %c0_61 = arith.constant 0 : index
    %c0_62 = arith.constant 0 : index
    %c0_63 = arith.constant 0 : index
    %103 = vector.load %arg4[%c0_61, %c0_62, %c0_63] : memref<2x8x32xf32, #tpu.memory_space<vmem>>, vector<2x8x32xf32>
    %cst_64 = arith.constant dense<0.000000e+00> : vector<16x32xf32>
    %104 = tpu.matmul %98, %99, %cst_64 {dimension_numbers = #tpu.dot_dimension_numbers<[1], [0], [0], [1], [0, 0, 1, 1], [], []>} : vector<16x32xf32>, vector<32x32xf32>, vector<16x32xf32> -> vector<16x32xf32>
    %cst_65 = arith.constant dense<0.000000e+00> : vector<16x32xf32>
    %105 = tpu.matmul %98, %100, %cst_65 {dimension_numbers = #tpu.dot_dimension_numbers<[1], [0], [0], [1], [0, 0, 1, 1], [], []>} : vector<16x32xf32>, vector<32x32xf32>, vector<16x32xf32> -> vector<16x32xf32>
    %cst_66 = arith.constant dense<0.000000e+00> : vector<16x32xf32>
    %106 = tpu.matmul %98, %101, %cst_66 {dimension_numbers = #tpu.dot_dimension_numbers<[1], [0], [0], [1], [0, 0, 1, 1], [], []>} : vector<16x32xf32>, vector<32x32xf32>, vector<16x32xf32> -> vector<16x32xf32>
    %107 = vector.shape_cast %104 : vector<16x32xf32> to vector<2x8x32xf32>
    %108 = vector.shape_cast %105 : vector<16x32xf32> to vector<2x8x32xf32>
    %109 = vector.shape_cast %106 : vector<16x32xf32> to vector<2x8x32xf32>
    %110 = tpu.concatenate %108, %108, %108, %108 in 1 : vector<2x8x32xf32>, vector<2x8x32xf32>, vector<2x8x32xf32>, vector<2x8x32xf32> -> vector<2x32x32xf32>
    %111 = vector.shape_cast %0 : vector<32x32xf32> to vector<1x32x32xf32>
    %112 = vector.broadcast %111 : vector<1x32x32xf32> to vector<2x32x32xf32>
    %113 = arith.mulf %110, %112 : vector<2x32x32xf32>
    %114 = tpu.concatenate %109, %109, %109, %109 in 1 : vector<2x8x32xf32>, vector<2x8x32xf32>, vector<2x8x32xf32>, vector<2x8x32xf32> -> vector<2x32x32xf32>
    %115 = vector.shape_cast %0 : vector<32x32xf32> to vector<1x32x32xf32>
    %116 = vector.broadcast %115 : vector<1x32x32xf32> to vector<2x32x32xf32>
    %117 = arith.mulf %114, %116 : vector<2x32x32xf32>
    "tpu.trace_start"() <{level = 10 : i32, message = "bqe,bfe->bqf"}> : () -> ()
    %cst_67 = arith.constant dense<0.000000e+00> : vector<2x8x32xf32>
    %118 = tpu.matmul %107, %113, %cst_67 {dimension_numbers = #tpu.dot_dimension_numbers<[2], [2], [1], [1], [0, 0, 0, 1, 1, 1], [0], [0]>} : vector<2x8x32xf32>, vector<2x32x32xf32>, vector<2x8x32xf32> -> vector<2x8x32xf32>
    "tpu.trace_stop"() : () -> ()
    %119 = arith.addf %118, %103 : vector<2x8x32xf32>
    %cst_68 = arith.constant dense<0xFF800000> : vector<2x8xf32>
    %120 = vector.multi_reduction <maximumf>, %119, %cst_68 [2] : vector<2x8x32xf32> to vector<2x8xf32>
    %121 = vector.shape_cast %120 : vector<2x8xf32> to vector<2x8x1xf32>
    %122 = vector.broadcast %121 : vector<2x8x1xf32> to vector<2x8x32xf32>
    %123 = arith.subf %119, %122 : vector<2x8x32xf32>
    %124 = math.exp %123 : vector<2x8x32xf32>
    %125 = vector.shape_cast %124 : vector<2x8x32xf32> to vector<16x32xf32>
    %cst_69 = arith.constant dense<0.000000e+00> : vector<16x32xf32>
    %126 = tpu.matmul %125, %1, %cst_69 {dimension_numbers = #tpu.dot_dimension_numbers<[1], [0], [0], [1], [0, 0, 1, 1], [], []>} : vector<16x32xf32>, vector<32x32xf32>, vector<16x32xf32> -> vector<16x32xf32>
    %cst_70 = arith.constant 1.000000e-30 : f32
    %127 = vector.broadcast %cst_70 : f32 to vector<16x32xf32>
    %128 = arith.maximumf %126, %127 : vector<16x32xf32>
    %129 = arith.divf %125, %128 : vector<16x32xf32>
    %130 = vector.shape_cast %129 : vector<16x32xf32> to vector<2x8x32xf32>
    "tpu.trace_start"() <{level = 10 : i32, message = "bqf,bfe->bqe"}> : () -> ()
    %cst_71 = arith.constant dense<0.000000e+00> : vector<2x8x32xf32>
    %131 = tpu.matmul %130, %117, %cst_71 {dimension_numbers = #tpu.dot_dimension_numbers<[2], [1], [1], [2], [0, 0, 0, 1, 1, 2], [0], [0]>} : vector<2x8x32xf32>, vector<2x32x32xf32>, vector<2x8x32xf32> -> vector<2x8x32xf32>
    "tpu.trace_stop"() : () -> ()
    %132 = vector.shape_cast %131 : vector<2x8x32xf32> to vector<16x32xf32>
    %cst_72 = arith.constant dense<0.000000e+00> : vector<16x32xf32>
    %133 = tpu.matmul %132, %102, %cst_72 {dimension_numbers = #tpu.dot_dimension_numbers<[1], [0], [0], [1], [0, 0, 1, 1], [], []>} : vector<16x32xf32>, vector<32x32xf32>, vector<16x32xf32> -> vector<16x32xf32>
    %134 = arith.addf %85, %133 : vector<16x32xf32>
    %c0_73 = arith.constant 0 : index
    %c0_74 = arith.constant 0 : index
    %135 = vector.load %arg26[%c0_73, %c0_74] : memref<1x32xf32, #tpu.memory_space<vmem>>, vector<1x32xf32>
    %136 = arith.mulf %134, %134 : vector<16x32xf32>
    %cst_75 = arith.constant dense<0.000000e+00> : vector<16xf32>
    %137 = vector.multi_reduction <add>, %136, %cst_75 [1] : vector<16x32xf32> to vector<16xf32>
    %138 = vector.shape_cast %137 : vector<16xf32> to vector<16x1xf32>
    %cst_76 = arith.constant 3.200000e+01 : f32
    %139 = vector.broadcast %cst_76 : f32 to vector<16x1xf32>
    %140 = arith.divf %138, %139 : vector<16x1xf32>
    %cst_77 = arith.constant 9.99999997E-7 : f32
    %141 = vector.broadcast %cst_77 : f32 to vector<16x1xf32>
    %142 = arith.addf %140, %141 : vector<16x1xf32>
    %143 = math.rsqrt %142 : vector<16x1xf32>
    %144 = vector.broadcast %143 : vector<16x1xf32> to vector<16x32xf32>
    %145 = arith.mulf %134, %144 : vector<16x32xf32>
    %146 = vector.broadcast %135 : vector<1x32xf32> to vector<16x32xf32>
    %147 = arith.mulf %146, %145 : vector<16x32xf32>
    %c0_78 = arith.constant 0 : index
    %c0_79 = arith.constant 0 : index
    %148 = vector.load %arg21[%c0_78, %c0_79] : memref<32x32xf32, #tpu.memory_space<vmem>>, vector<32x32xf32>
    %c0_80 = arith.constant 0 : index
    %c0_81 = arith.constant 0 : index
    %149 = vector.load %arg22[%c0_80, %c0_81] : memref<32x32xf32, #tpu.memory_space<vmem>>, vector<32x32xf32>
    %c0_82 = arith.constant 0 : index
    %c0_83 = arith.constant 0 : index
    %150 = vector.load %arg23[%c0_82, %c0_83] : memref<32x32xf32, #tpu.memory_space<vmem>>, vector<32x32xf32>
    %c0_84 = arith.constant 0 : index
    %c0_85 = arith.constant 0 : index
    %151 = vector.load %arg24[%c0_84, %c0_85] : memref<32x32xf32, #tpu.memory_space<vmem>>, vector<32x32xf32>
    %c0_86 = arith.constant 0 : index
    %c0_87 = arith.constant 0 : index
    %c0_88 = arith.constant 0 : index
    %152 = vector.load %arg5[%c0_86, %c0_87, %c0_88] : memref<2x8x32xf32, #tpu.memory_space<vmem>>, vector<2x8x32xf32>
    %cst_89 = arith.constant dense<0.000000e+00> : vector<16x32xf32>
    %153 = tpu.matmul %147, %148, %cst_89 {dimension_numbers = #tpu.dot_dimension_numbers<[1], [0], [0], [1], [0, 0, 1, 1], [], []>} : vector<16x32xf32>, vector<32x32xf32>, vector<16x32xf32> -> vector<16x32xf32>
    %cst_90 = arith.constant dense<0.000000e+00> : vector<16x32xf32>
    %154 = tpu.matmul %84, %149, %cst_90 {dimension_numbers = #tpu.dot_dimension_numbers<[1], [0], [0], [1], [0, 0, 1, 1], [], []>} : vector<16x32xf32>, vector<32x32xf32>, vector<16x32xf32> -> vector<16x32xf32>
    %cst_91 = arith.constant dense<0.000000e+00> : vector<16x32xf32>
    %155 = tpu.matmul %84, %150, %cst_91 {dimension_numbers = #tpu.dot_dimension_numbers<[1], [0], [0], [1], [0, 0, 1, 1], [], []>} : vector<16x32xf32>, vector<32x32xf32>, vector<16x32xf32> -> vector<16x32xf32>
    %156 = vector.shape_cast %153 : vector<16x32xf32> to vector<2x8x32xf32>
    %157 = vector.shape_cast %154 : vector<16x32xf32> to vector<2x8x32xf32>
    %158 = vector.shape_cast %155 : vector<16x32xf32> to vector<2x8x32xf32>
    %159 = tpu.concatenate %157, %157, %157, %157 in 1 : vector<2x8x32xf32>, vector<2x8x32xf32>, vector<2x8x32xf32>, vector<2x8x32xf32> -> vector<2x32x32xf32>
    %160 = vector.shape_cast %0 : vector<32x32xf32> to vector<1x32x32xf32>
    %161 = vector.broadcast %160 : vector<1x32x32xf32> to vector<2x32x32xf32>
    %162 = arith.mulf %159, %161 : vector<2x32x32xf32>
    %163 = tpu.concatenate %158, %158, %158, %158 in 1 : vector<2x8x32xf32>, vector<2x8x32xf32>, vector<2x8x32xf32>, vector<2x8x32xf32> -> vector<2x32x32xf32>
    %164 = vector.shape_cast %0 : vector<32x32xf32> to vector<1x32x32xf32>
    %165 = vector.broadcast %164 : vector<1x32x32xf32> to vector<2x32x32xf32>
    %166 = arith.mulf %163, %165 : vector<2x32x32xf32>
    "tpu.trace_start"() <{level = 10 : i32, message = "bqe,bfe->bqf"}> : () -> ()
    %cst_92 = arith.constant dense<0.000000e+00> : vector<2x8x32xf32>
    %167 = tpu.matmul %156, %162, %cst_92 {dimension_numbers = #tpu.dot_dimension_numbers<[2], [2], [1], [1], [0, 0, 0, 1, 1, 1], [0], [0]>} : vector<2x8x32xf32>, vector<2x32x32xf32>, vector<2x8x32xf32> -> vector<2x8x32xf32>
    "tpu.trace_stop"() : () -> ()
    %168 = arith.addf %167, %152 : vector<2x8x32xf32>
    %cst_93 = arith.constant dense<0xFF800000> : vector<2x8xf32>
    %169 = vector.multi_reduction <maximumf>, %168, %cst_93 [2] : vector<2x8x32xf32> to vector<2x8xf32>
    %170 = vector.shape_cast %169 : vector<2x8xf32> to vector<2x8x1xf32>
    %171 = vector.broadcast %170 : vector<2x8x1xf32> to vector<2x8x32xf32>
    %172 = arith.subf %168, %171 : vector<2x8x32xf32>
    %173 = math.exp %172 : vector<2x8x32xf32>
    %174 = vector.shape_cast %173 : vector<2x8x32xf32> to vector<16x32xf32>
    %cst_94 = arith.constant dense<0.000000e+00> : vector<16x32xf32>
    %175 = tpu.matmul %174, %1, %cst_94 {dimension_numbers = #tpu.dot_dimension_numbers<[1], [0], [0], [1], [0, 0, 1, 1], [], []>} : vector<16x32xf32>, vector<32x32xf32>, vector<16x32xf32> -> vector<16x32xf32>
    %cst_95 = arith.constant 1.000000e-30 : f32
    %176 = vector.broadcast %cst_95 : f32 to vector<16x32xf32>
    %177 = arith.maximumf %175, %176 : vector<16x32xf32>
    %178 = arith.divf %174, %177 : vector<16x32xf32>
    %179 = vector.shape_cast %178 : vector<16x32xf32> to vector<2x8x32xf32>
    "tpu.trace_start"() <{level = 10 : i32, message = "bqf,bfe->bqe"}> : () -> ()
    %cst_96 = arith.constant dense<0.000000e+00> : vector<2x8x32xf32>
    %180 = tpu.matmul %179, %166, %cst_96 {dimension_numbers = #tpu.dot_dimension_numbers<[2], [1], [1], [2], [0, 0, 0, 1, 1, 2], [0], [0]>} : vector<2x8x32xf32>, vector<2x32x32xf32>, vector<2x8x32xf32> -> vector<2x8x32xf32>
    "tpu.trace_stop"() : () -> ()
    %181 = vector.shape_cast %180 : vector<2x8x32xf32> to vector<16x32xf32>
    %cst_97 = arith.constant dense<0.000000e+00> : vector<16x32xf32>
    %182 = tpu.matmul %181, %151, %cst_97 {dimension_numbers = #tpu.dot_dimension_numbers<[1], [0], [0], [1], [0, 0, 1, 1], [], []>} : vector<16x32xf32>, vector<32x32xf32>, vector<16x32xf32> -> vector<16x32xf32>
    %183 = arith.addf %134, %182 : vector<16x32xf32>
    %c0_98 = arith.constant 0 : index
    %c0_99 = arith.constant 0 : index
    %184 = vector.load %arg27[%c0_98, %c0_99] : memref<1x32xf32, #tpu.memory_space<vmem>>, vector<1x32xf32>
    %185 = arith.mulf %183, %183 : vector<16x32xf32>
    %cst_100 = arith.constant dense<0.000000e+00> : vector<16xf32>
    %186 = vector.multi_reduction <add>, %185, %cst_100 [1] : vector<16x32xf32> to vector<16xf32>
    %187 = vector.shape_cast %186 : vector<16xf32> to vector<16x1xf32>
    %cst_101 = arith.constant 3.200000e+01 : f32
    %188 = vector.broadcast %cst_101 : f32 to vector<16x1xf32>
    %189 = arith.divf %187, %188 : vector<16x1xf32>
    %cst_102 = arith.constant 9.99999997E-7 : f32
    %190 = vector.broadcast %cst_102 : f32 to vector<16x1xf32>
    %191 = arith.addf %189, %190 : vector<16x1xf32>
    %192 = math.rsqrt %191 : vector<16x1xf32>
    %193 = vector.broadcast %192 : vector<16x1xf32> to vector<16x32xf32>
    %194 = arith.mulf %183, %193 : vector<16x32xf32>
    %195 = vector.broadcast %184 : vector<1x32xf32> to vector<16x32xf32>
    %196 = arith.mulf %195, %194 : vector<16x32xf32>
    %c0_103 = arith.constant 0 : index
    %c0_104 = arith.constant 0 : index
    %197 = vector.load %arg29[%c0_103, %c0_104] : memref<32x64xf32, #tpu.memory_space<vmem>>, vector<32x64xf32>
    %c0_105 = arith.constant 0 : index
    %c0_106 = arith.constant 0 : index
    %198 = vector.load %arg30[%c0_105, %c0_106] : memref<64x32xf32, #tpu.memory_space<vmem>>, vector<64x32xf32>
    %cst_107 = arith.constant dense<0.000000e+00> : vector<16x64xf32>
    %199 = tpu.matmul %196, %197, %cst_107 {dimension_numbers = #tpu.dot_dimension_numbers<[1], [0], [0], [1], [0, 0, 1, 1], [], []>} : vector<16x32xf32>, vector<32x64xf32>, vector<16x64xf32> -> vector<16x64xf32>
    %cst_108 = arith.constant 0.000000e+00 : f32
    %200 = vector.broadcast %cst_108 : f32 to vector<16x64xf32>
    %201 = arith.maximumf %199, %200 : vector<16x64xf32>
    %cst_109 = arith.constant dense<0.000000e+00> : vector<16x32xf32>
    %202 = tpu.matmul %201, %198, %cst_109 {dimension_numbers = #tpu.dot_dimension_numbers<[1], [0], [0], [1], [0, 0, 1, 1], [], []>} : vector<16x64xf32>, vector<64x32xf32>, vector<16x32xf32> -> vector<16x32xf32>
    %203 = arith.addf %183, %202 : vector<16x32xf32>
    %c0_110 = arith.constant 0 : index
    %c0_111 = arith.constant 0 : index
    %204 = vector.load %arg28[%c0_110, %c0_111] : memref<1x32xf32, #tpu.memory_space<vmem>>, vector<1x32xf32>
    %205 = arith.mulf %203, %203 : vector<16x32xf32>
    %cst_112 = arith.constant dense<0.000000e+00> : vector<16xf32>
    %206 = vector.multi_reduction <add>, %205, %cst_112 [1] : vector<16x32xf32> to vector<16xf32>
    %207 = vector.shape_cast %206 : vector<16xf32> to vector<16x1xf32>
    %cst_113 = arith.constant 3.200000e+01 : f32
    %208 = vector.broadcast %cst_113 : f32 to vector<16x1xf32>
    %209 = arith.divf %207, %208 : vector<16x1xf32>
    %cst_114 = arith.constant 9.99999997E-7 : f32
    %210 = vector.broadcast %cst_114 : f32 to vector<16x1xf32>
    %211 = arith.addf %209, %210 : vector<16x1xf32>
    %212 = math.rsqrt %211 : vector<16x1xf32>
    %213 = vector.broadcast %212 : vector<16x1xf32> to vector<16x32xf32>
    %214 = arith.mulf %203, %213 : vector<16x32xf32>
    %215 = vector.broadcast %204 : vector<1x32xf32> to vector<16x32xf32>
    %216 = arith.mulf %215, %214 : vector<16x32xf32>
    %c0_115 = arith.constant 0 : index
    %c0_116 = arith.constant 0 : index
    %217 = vector.load %arg31[%c0_115, %c0_116] : memref<32x128xf32, #tpu.memory_space<vmem>>, vector<32x128xf32>
    %cst_117 = arith.constant dense<0.000000e+00> : vector<16x128xf32>
    %218 = tpu.matmul %216, %217, %cst_117 {dimension_numbers = #tpu.dot_dimension_numbers<[1], [0], [0], [1], [0, 0, 1, 1], [], []>} : vector<16x32xf32>, vector<32x128xf32>, vector<16x128xf32> -> vector<16x128xf32>
    %c0_118 = arith.constant 0 : index
    %c0_119 = arith.constant 0 : index
    %219 = vector.load %arg32[%c0_118, %c0_119] : memref<16x128xf32, #tpu.memory_space<vmem>>, vector<16x128xf32>
    tpu.vector_store %arg32[%c0_118, %c0_119], %218 {strides = array<i32>} : memref<16x128xf32, #tpu.memory_space<vmem>>, vector<16x128xf32>,
    %c0_120 = arith.constant 0 : index
    %c0_121 = arith.constant 0 : index
    %220 = vector.load %arg2[%c0_120, %c0_121] : memref<16x1xi32, #tpu.memory_space<vmem>>, vector<16x1xi32>
    %221 = tpu.iota {dimensions = array<i32: 1>} : vector<16x128xi32>
    %c16_i32 = arith.constant 16 : i32
    %222 = vector.broadcast %c16_i32 : i32 to vector<16x128xi32>
    %223 = arith.cmpi slt, %221, %222 : vector<16x128xi32>
    %cst_122 = arith.constant -1.000000e+09 : f32
    %224 = vector.broadcast %cst_122 : f32 to vector<16x128xf32>
    %225 = arith.select %223, %218, %224 : vector<16x128xi1>, vector<16x128xf32>
    %cst_123 = arith.constant dense<0xFF800000> : vector<16xf32>
    %226 = vector.multi_reduction <maximumf>, %225, %cst_123 [1] : vector<16x128xf32> to vector<16xf32>
    %227 = vector.shape_cast %226 : vector<16xf32> to vector<16x1xf32>
    %228 = vector.broadcast %227 : vector<16x1xf32> to vector<16x128xf32>
    %229 = arith.subf %225, %228 : vector<16x128xf32>
    %230 = math.exp %229 : vector<16x128xf32>
    %cst_124 = arith.constant dense<0.000000e+00> : vector<16xf32>
    %231 = vector.multi_reduction <add>, %230, %cst_124 [1] : vector<16x128xf32> to vector<16xf32>
    %232 = vector.shape_cast %231 : vector<16xf32> to vector<16x1xf32>
    %233 = math.log %232 : vector<16x1xf32>
    %234 = arith.addf %227, %233 : vector<16x1xf32>
    %235 = vector.broadcast %220 : vector<16x1xi32> to vector<16x128xi32>
    %236 = arith.cmpi eq, %221, %235 : vector<16x128xi32>
    %237 = arith.extui %236 : vector<16x128xi1> to vector<16x128xi32>
    %238 = arith.sitofp %237 : vector<16x128xi32> to vector<16x128xf32>
    %239 = arith.mulf %238, %218 : vector<16x128xf32>
    %cst_125 = arith.constant dense<0.000000e+00> : vector<16xf32>
    %240 = vector.multi_reduction <add>, %239, %cst_125 [1] : vector<16x128xf32> to vector<16xf32>
    %241 = vector.shape_cast %240 : vector<16xf32> to vector<16x1xf32>
    %c-100_i32 = arith.constant -100 : i32
    %242 = vector.broadcast %c-100_i32 : i32 to vector<16x1xi32>
    %243 = arith.cmpi ne, %220, %242 : vector<16x1xi32>
    %244 = arith.extui %243 : vector<16x1xi1> to vector<16x1xi32>
    %245 = arith.sitofp %244 : vector<16x1xi32> to vector<16x1xf32>
    %246 = arith.subf %234, %241 : vector<16x1xf32>
    %247 = arith.mulf %246, %245 : vector<16x1xf32>
    %248 = vector.shape_cast %247 : vector<16x1xf32> to vector<1x16x1xf32>
    %cst_126 = arith.constant dense<0.000000e+00> : vector<1xf32>
    %249 = vector.multi_reduction <add>, %248, %cst_126 [1, 2] : vector<1x16x1xf32> to vector<1xf32>
    %250 = vector.shape_cast %249 : vector<1xf32> to vector<1x1x1xf32>
    %251 = vector.extract %250[0, 0, 0] : f32 from vector<1x1x1xf32>
    %252 = vector.broadcast %251 : f32 to vector<1x1xf32>
    %253 = vector.shape_cast %245 : vector<16x1xf32> to vector<1x16x1xf32>
    %cst_127 = arith.constant dense<0.000000e+00> : vector<1xf32>
    %254 = vector.multi_reduction <add>, %253, %cst_127 [1, 2] : vector<1x16x1xf32> to vector<1xf32>
    %255 = vector.shape_cast %254 : vector<1xf32> to vector<1x1x1xf32>
    %256 = vector.extract %255[0, 0, 0] : f32 from vector<1x1x1xf32>
    %257 = vector.broadcast %256 : f32 to vector<1x1xf32>
    %cst_128 = arith.constant 0.000000e+00 : f32
    %258 = vector.broadcast %cst_128 : f32 to vector<1x1xf32>
    %259 = arith.cmpf ogt, %257, %258 : vector<1x1xf32>
    %cst_129 = arith.constant 1.000000e+00 : f32
    %260 = vector.broadcast %cst_129 : f32 to vector<1x1xf32>
    %261 = arith.maximumf %257, %260 : vector<1x1xf32>
    %262 = arith.divf %252, %261 : vector<1x1xf32>
    %cst_130 = arith.constant 0.000000e+00 : f32
    %263 = vector.broadcast %cst_130 : f32 to vector<1x1xf32>
    %264 = arith.select %259, %262, %263 : vector<1x1xi1>, vector<1x1xf32>
    %265 = vector.shape_cast %264 : vector<1x1xf32> to vector<1x1xf32>
    %266 = vector.broadcast %265 : vector<1x1xf32> to vector<1x128xf32>
    %c0_131 = arith.constant 0 : index
    %c0_132 = arith.constant 0 : index
    %267 = vector.load %arg33[%c0_131, %c0_132] : memref<1x128xf32, #tpu.memory_space<vmem>>, vector<1x128xf32>
    tpu.vector_store %arg33[%c0_131, %c0_132], %266 {strides = array<i32>} : memref<1x128xf32, #tpu.memory_space<vmem>>, vector<1x128xf32>,
    return
  }
}

</mosaic_0001>

<bundles_post_ra>
// kernel: tile.20
= control target key start
LH: loop header
LB: loop body
LE: loop exit
PB: predicated region body
PF: predicated region fallthrough
CT: control target
= control target key end

     0   :  { %vm82_vm0 = vcmask 1047556   ;;  %vm84_vm1 = vcmask 64512   ;;  %s195_s9 = smov 24   ;;  %s196_s14 = smov 8   ;;  %vm103_vm2 = vcmask 261312   ;;  %vm124_vm3 = vcmask 195712   ;;  %s289_s0 = inlined_call_operand.vmem [shape: f32[2,8,4,8], index: 0, kind: input, shape index: {}]   ;;  %s290_s1 = inlined_call_operand.vmem [shape: f32[2,8,32], index: 1, kind: output, shape index: {}]  }
   0x1   :  { %v180_v0 = vld [vmem:[%s289_s0 + $0x1c] sm:$0xf]  ;;  %v181_v1 = vld [vmem:[%s289_s0 + $0x18] sm:$0xf]  ;;  %v182_v2 = vld [vmem:[%s289_s0 + $0x14] sm:$0xf] }
   0x2   :  { %48 = vst [vmem:[#allocation0 + $0x38] sm:$0xf] %v180_v0  ;;  %53 = vst [vmem:[#allocation0 + $0x30] sm:$0xf] %v181_v1  ;;  %v183_v3 = vld [vmem:[%s289_s0 + $0x10] sm:$0xf] }
   0x3   :  { %58 = vst [vmem:[#allocation0 + $0x28] sm:$0xf] %v182_v2  ;;  %v184_v4 = vld [vmem:[%s289_s0 + $0xc] sm:$0xf]  ;;  %v185_v5 = vld [vmem:[%s289_s0 + $0x8] sm:$0xf] }
   0x4   :  { %63 = vst [vmem:[#allocation0 + $0x20] sm:$0xf] %v183_v3  ;;  %68 = vst [vmem:[#allocation0 + $0x18] sm:$0xf] %v184_v4  ;;  %v186_v6 = vld [vmem:[%s289_s0 + $0x4] sm:$0xf] }
   0x5   :  { %73 = vst [vmem:[#allocation0 + $0x10] sm:$0xf] %v185_v5  ;;  %v78_v7 = vld [vmem:[%s289_s0] sm:$0xf]  ;;  %77 = vst [vmem:[#allocation0 + $0x8] sm:$0xf] %v186_v6 }
   0x6   :  { %79 = vst [vmem:[#allocation0] sm:$0xf] %v78_v7  ;;  %v172_v8 = vld [vmem:[%s289_s0 + $0x3c] sm:$0xf]  ;;  %v173_v9 = vld [vmem:[%s289_s0 + $0x38] sm:$0xf] }
   0x7   :  { %8 = vst [vmem:[#allocation0 + $0x78] sm:$0xf] %v172_v8  ;;  %13 = vst [vmem:[#allocation0 + $0x70] sm:$0xf] %v173_v9  ;;  %v174_v10 = vld [vmem:[%s289_s0 + $0x34] sm:$0xf] }
   0x8   :  { %v175_v11 = vld [vmem:[%s289_s0 + $0x30] sm:$0xf]  ;;  %v176_v12 = vld [vmem:[%s289_s0 + $0x2c] sm:$0xf]  ;;  %18 = vst [vmem:[#allocation0 + $0x68] sm:$0xf] %v174_v10 }
   0x9   :  { %23 = vst [vmem:[#allocation0 + $0x60] sm:$0xf] %v175_v11  ;;  %28 = vst [vmem:[#allocation0 + $0x58] sm:$0xf] %v176_v12  ;;  %v177_v13 = vld [vmem:[%s289_s0 + $0x28] sm:$0xf] }
   0xa   :  { %v178_v14 = vld [vmem:[%s289_s0 + $0x24] sm:$0xf]  ;;  %v179_v15 = vld [vmem:[%s289_s0 + $0x20] sm:$0xf]  ;;  %33 = vst [vmem:[#allocation0 + $0x50] sm:$0xf] %v177_v13 }
   0xb   :  { %38 = vst [vmem:[#allocation0 + $0x48] sm:$0xf] %v178_v14  ;;  %43 = vst [vmem:[#allocation0 + $0x40] sm:$0xf] %v179_v15  ;;  %s194_s0 = smov 16   ;;  %vm145_vm4 = vcmask 130112  }
   0xc   :  { %v119_v16 = vld [vmem:[#allocation0 + $0x2] ss:$8 sm:$0xf0]   ;;  %v98_v17 = vld [vmem:[#allocation0 + $0x3] ss:$8 sm:$0xf0]  }
   0xd   :  { %v117_v18 = vld [vmem:[#allocation0 + $0x2] ss:$8 sm:$0xf]   ;;  %v96_v19 = vld [vmem:[#allocation0 + $0x3] ss:$8 sm:$0xf]  }
   0xe   :  { %v121_v20 = vsel %vm82_vm0, %v119_v16, %v117_v18  ;;  %v100_v21 = vsel %vm82_vm0, %v98_v17, %v96_v19  ;;  %v138_v24 = vld [vmem:[#allocation0 + $0x1] ss:$8 sm:$0xf]   ;;  %v80_v32 = vld [vmem:[#allocation0] ss:$8 sm:$0xf]  }
   0xf   :  { %122 = vrot.lane.b32.xlu1 %v121_v20, %s194_s0  ;;  %101 = vrot.lane.b32.xlu0 %v100_v21, %s195_s9  ;;  %v140_v25 = vld [vmem:[#allocation0 + $0x1] ss:$8 sm:$0xf0]   ;;  %v81_v33 = vld [vmem:[#allocation0] ss:$8 sm:$0xf0]  }
  0x10   :  { %v129_v22 = vld [vmem:[#allocation0 + $0x42] ss:$8 sm:$0xf0]   ;;  %v108_v23 = vld [vmem:[#allocation0 + $0x43] ss:$8 sm:$0xf0]   ;;  %v83_v34 = vsel %vm82_vm0, %v81_v33, %v80_v32  ;;  %v142_v38 = vsel %vm82_vm0, %v140_v25, %v138_v24 }
  0x11   :  { %v150_v31 = vld [vmem:[#allocation0 + $0x41] ss:$8 sm:$0xf0]   ;;  %v89_v36 = vld [vmem:[#allocation0 + $0x40] ss:$8 sm:$0xf0]  }
  0x12   :  { %v127_v26 = vld [vmem:[#allocation0 + $0x42] ss:$8 sm:$0xf]   ;;  %v106_v27 = vld [vmem:[#allocation0 + $0x43] ss:$8 sm:$0xf]  }
  0x13   :  { %v131_v28 = vsel %vm82_vm0, %v129_v22, %v127_v26  ;;  %v110_v29 = vsel %vm82_vm0, %v108_v23, %v106_v27  ;;  %v148_v30 = vld [vmem:[#allocation0 + $0x41] ss:$8 sm:$0xf]   ;;  %v87_v35 = vld [vmem:[#allocation0 + $0x40] ss:$8 sm:$0xf]  }
  0x14   :  { %132 = vrot.lane.b32.xlu1 %v131_v28, %s194_s0  ;;  %111 = vrot.lane.b32.xlu0 %v110_v29, %s195_s9  ;;  %v152_v37 = vsel %vm82_vm0, %v150_v31, %v148_v30  ;;  %85 = vst.msk [vmem:[%s290_s1] sm:$0xff] %vm84_vm1, %v83_v34   ;;  %v91_v39 = vsel %vm82_vm0, %v89_v36, %v87_v35 }
  0x15   :  { %187 = vst.msk [vmem:[%s290_s1 + $0x8] sm:$0xff] %vm84_vm1, %v91_v39  }
  0x18   :  { %153 = vrot.lane.b32.xlu1 %v152_v37, %s196_s14  ;;  %143 = vrot.lane.b32.xlu0 %v142_v38, %s196_s14 }
  0x81   :  { %v123_v40 = vpop.permute.xlu1 %122   ;;  %v102_v41 = vpop.permute.xlu0 %101  }
  0x82   :  { %104 = vst.msk [vmem:[%s290_s1] sm:$0xff] %vm103_vm2, %v102_v41  }
  0x83   :  { %125 = vst.msk [vmem:[%s290_s1] sm:$0xff] %vm124_vm3, %v123_v40  }
  0x86   :  { %v133_v42 = vpop.permute.xlu1 %132   ;;  %v112_v43 = vpop.permute.xlu0 %111  }
  0x87   :  { %188 = vst.msk [vmem:[%s290_s1 + $0x8] sm:$0xff] %vm103_vm2, %v112_v43  }
  0x88   :  { %189 = vst.msk [vmem:[%s290_s1 + $0x8] sm:$0xff] %vm124_vm3, %v133_v42  }
  0x8a   :  { %v154_v44 = vpop.permute.xlu1 %153   ;;  %v144_v45 = vpop.permute.xlu0 %143  }
  0x8b   :  { %190 = vst.msk [vmem:[%s290_s1 + $0x8] sm:$0xff] %vm145_vm4, %v154_v44   ;;  %146 = vst.msk [vmem:[%s290_s1] sm:$0xff] %vm145_vm4, %v144_v45  }

// kernel: decoder_forward.1
= control target key start
LH: loop header
LB: loop body
LE: loop exit
PB: predicated region body
PF: predicated region fallthrough
CT: control target
= control target key end

     0   :  { %s4238_s6 = smov 1   ;;  %s4239_s10 = smov 2   ;;  %s4864_s0 = inlined_call_operand.smem [shape: u32[34], index: -1, kind: input, shape index: {}] }
   0x1   :  { %s4284_s5 = sld [smem:[%s4864_s0]]   ;;  %s4240_s14 = smov 3  }
   0x2   :  { %s4289_s9 = sld [smem:[%s4864_s0 + %s4238_s6]]   ;;  %s4241_s18 = smov 4  }
   0x3   :  { %s4294_s13 = sld [smem:[%s4864_s0 + %s4239_s10]]   ;;  %s4242_s22 = smov 5  }
   0x4   :  { %s4299_s17 = sld [smem:[%s4864_s0 + %s4240_s14]]   ;;  %s4243_s26 = smov 6  }
   0x5   :  { %s4304_s21 = sld [smem:[%s4864_s0 + %s4241_s18]]   ;;  %s4244_s30 = smov 7  }
   0x6   :  { %s4309_s25 = sld [smem:[%s4864_s0 + %s4242_s22]]   ;;  %s4245_s4 = smov 8  }
   0x7   :  { %s4314_s29 = sld [smem:[%s4864_s0 + %s4243_s26]]   ;;  %s4246_s10 = smov 9  }
   0x8   :  { %s4319_s3 = sld [smem:[%s4864_s0 + %s4244_s30]]   ;;  %s4247_s15 = smov 10  }
   0x9   :  { %4876 = sst [smem:[#allocation5_spill]] %s4294_s13  ;;  %s4248_s20 = smov 11  }
   0xa   :  { %s4324_s8 = sld [smem:[%s4864_s0 + %s4245_s4]]   ;;  %s4249_s26 = smov 12  }
   0xb   :  { %4877 = sst [smem:[#allocation6_spill]] %s4304_s21  ;;  %s4250_s1 = smov 13  }
   0xc   :  { %4878 = sst [smem:[#allocation7_spill]] %s4309_s25  ;;  %s4251_s7 = smov 14  }
   0xd   :  { %s4329_s14 = sld [smem:[%s4864_s0 + %s4246_s10]]   ;;  %s4253_s22 = smov 16  }
   0xe   :  { %s4334_s19 = sld [smem:[%s4864_s0 + %s4247_s15]]   ;;  %s4252_s15 = smov 15  }
   0xf   :  { %s4339_s24 = sld [smem:[%s4864_s0 + %s4248_s20]]   ;;  %s4254_s28 = smov 17  }
  0x10   :  { %s4344_s30 = sld [smem:[%s4864_s0 + %s4249_s26]]  }
  0x11   :  { %s4349_s6 = sld [smem:[%s4864_s0 + %s4250_s1]]  }
  0x12   :  { %s4354_s12 = sld [smem:[%s4864_s0 + %s4251_s7]]   ;;  %s4255_s7 = smov 18  }
  0x13   :  { %s4359_s20 = sld [smem:[%s4864_s0 + %s4252_s15]]   ;;  %s4256_s15 = smov 19  }
  0x14   :  { %s4364_s27 = sld [smem:[%s4864_s0 + %s4253_s22]]   ;;  %s4257_s22 = smov 20  }
  0x15   :  { %s4369_s4 = sld [smem:[%s4864_s0 + %s4254_s28]]   ;;  %s4258_s28 = smov 21  }
  0x16   :  { %s4374_s13 = sld [smem:[%s4864_s0 + %s4255_s7]]   ;;  %s4259_s7 = smov 22  }
  0x17   :  { %s4379_s25 = sld [smem:[%s4864_s0 + %s4256_s15]]   ;;  %s4260_s15 = smov 23  }
  0x18   :  { %4879 = sst [smem:[#allocation8_spill]] %s4354_s12 }
  0x19   :  { %s4384_s12 = sld [smem:[%s4864_s0 + %s4257_s22]]   ;;  %s4261_s22 = smov 24  }
  0x1a   :  { %s4389_s21 = sld [smem:[%s4864_s0 + %s4258_s28]]   ;;  %s4262_s28 = smov 25  }
  0x1c   :  { %4880 = sst [smem:[#allocation9_spill]] %s4374_s13 }
  0x1d   :  { %4881 = sst [smem:[#allocation10_spill]] %s4379_s25 }
  0x1e   :  { %s4394_s13 = sld [smem:[%s4864_s0 + %s4259_s7]]   ;;  %s4263_s7 = smov 26  }
  0x1f   :  { %4882 = sst [smem:[#allocation11_spill]] %s4384_s12 }
  0x20   :  { %4883 = sst [smem:[#allocation12_spill]] %s4389_s21 }
  0x21   :  { %s4399_s25 = sld [smem:[%s4864_s0 + %s4260_s15]]   ;;  %s4264_s15 = smov 27  }
  0x22   :  { %s4404_s12 = sld [smem:[%s4864_s0 + %s4261_s22]]   ;;  %s4265_s22 = smov 28  }
  0x23   :  { %s4409_s21 = sld [smem:[%s4864_s0 + %s4262_s28]]   ;;  %s4266_s28 = smov 29  }
  0x24   :  { %4884 = sst [smem:[#allocation13_spill]] %s4394_s13 }
  0x25   :  { %s4414_s13 = sld [smem:[%s4864_s0 + %s4263_s7]]   ;;  %s4267_s7 = smov 30  }
  0x27   :  { %4885 = sst [smem:[#allocation14_spill]] %s4399_s25 }
  0x28   :  { %4886 = sst [smem:[#allocation15_spill]] %s4404_s12 }
  0x29   :  { %4887 = sst [smem:[#allocation16_spill]] %s4409_s21 }
  0x2a   :  { %s4419_s25 = sld [smem:[%s4864_s0 + %s4264_s15]]   ;;  %s4268_s15 = smov 31  }
  0x2b   :  { %4888 = sst [smem:[#allocation17_spill]] %s4414_s13 }
  0x2c   :  { %s4424_s12 = sld [smem:[%s4864_s0 + %s4265_s22]]   ;;  %s4269_s22 = smov 32  }
  0x2d   :  { %s4429_s21 = sld [smem:[%s4864_s0 + %s4266_s28]]   ;;  %s4270_s28 = smov 33  }
  0x2e   :  { %s4434_s13 = sld [smem:[%s4864_s0 + %s4267_s7]]  }
  0x30   :  { %4889 = sst [smem:[#allocation18_spill]] %s4419_s25 }
  0x31   :  { %s4439_s25 = sld [smem:[%s4864_s0 + %s4268_s15]]  }
  0x32   :  { %4890 = sst [smem:[#allocation19_spill]] %s4424_s12 }
  0x33   :  { %4891 = sst [smem:[#allocation20_spill]] %s4429_s21 }
  0x34   :  { %s4444_s12 = sld [smem:[%s4864_s0 + %s4269_s22]]  }
  0x35   :  { %s4449_s21 = sld [smem:[%s4864_s0 + %s4270_s28]]  }
  0x36   :  { %v4452_v0 = vld [vmem:[%s4284_s5] sm:$0xff]  ;;  %vm151_vm0 = vcmask 261120   ;;  %v4455_v1 = vld [vmem:[%s4284_s5 + $0x8] sm:$0xff] }
  0x37   :  { %73 = vsyncpa [#allocation3], 0  ;;  %v149_v2 = vmul.f32 %v4452_v0, %v4452_v0  ;;  %v150_v3 = vmul.f32 %v4455_v1, %v4455_v1  ;;  %v175_v6 = vld [vmem:[%s4324_s8] sm:$0xff]  ;;  %v176_v7 = vld [vmem:[%s4324_s8 + $0x8] sm:$0xff]  ;;  %v4271_v37 = vmov 0.0|0.0   ;;  %vm4272_vm1 = vmmov 0  }
  0x38   :  { %v179_v8 = vld [vmem:[%s4329_s14] sm:$0xff]  ;;  %v3848_v9 = vpack.c.bf16 %v176_v7, %v175_v6  ;;  %v180_v10 = vld [vmem:[%s4329_s14 + $0x8] sm:$0xff]  ;;  %v177_v11 = vld [vmem:[%s4324_s8 + $0x10] sm:$0xff]  ;;  %v4273_v38 = vmov 0.0   ;;  %s4894_s0 = sld [smem:[#allocation16_spill]]  ;;  %s4895_s5 = sld [smem:[#allocation9_spill]] }
  0x39   :  { %v152_v4 = vsel %vm151_vm0, %v149_v2, 0.0  ;;  %v155_v5 = vsel %vm151_vm0, %v150_v3, 0.0  ;;  %v178_v12 = vld [vmem:[%s4324_s8 + $0x18] sm:$0xff]  ;;  %v3856_v13 = vpack.c.bf16 %v180_v10, %v179_v8  ;;  %v181_v15 = vld [vmem:[%s4329_s14 + $0x10] sm:$0xff]  ;;  %v183_v18 = vld [vmem:[%s4334_s19] sm:$0xff]  ;;  %vm1058_vm3 = vcmask 523264  }
  0x3a   :  { %153 = vadd.xlane.f32.xlu0 %v152_v4  ;;  %v3852_v14 = vpack.c.bf16 %v178_v12, %v177_v11  ;;  %3849 = vmatprep.subr.bf16.mxu0 %v3848_v9  ;;  %v182_v16 = vld [vmem:[%s4329_s14 + $0x18] sm:$0xff]  ;;  %v184_v19 = vld [vmem:[%s4334_s19 + $0x8] sm:$0xff]  ;;  %v3205_v28 = vld [vmem:[%s4344_s30] ss:$0 sm:$0xff]  ;;  %s4900_s8 = sld [smem:[#allocation8_spill]]  ;;  %s4901_s14 = sld [smem:[#allocation12_spill]] }
  0x3b   :  { %3851 = vmatpush3.bf16.msra.mxu0 %v3848_v9  ;;  %3857 = vmatprep.subr.bf16.mxu1 %v3856_v13  ;;  %v3860_v17 = vpack.c.bf16 %v182_v16, %v181_v15  ;;  %v3864_v20 = vpack.c.bf16 %v184_v19, %v183_v18  ;;  %v185_v32 = vld [vmem:[%s4334_s19 + $0x10] sm:$0xff]  ;;  %v186_v33 = vld [vmem:[%s4334_s19 + $0x18] sm:$0xff]  ;;  %v4491_v39 = vld [vmem:[%s4314_s29] sm:$0xff]  ;;  %s4902_s19 = sld [smem:[#allocation14_spill]]  ;;  %s4904_s30 = sld [smem:[#allocation7_spill]]  ;;  %vm3121_vm9 = vcmask 7168  }
  0x3c   :  { %3859 = vmatpush3.bf16.msra.mxu1 %v3856_v13  ;;  %3853 = vmatprep.subr.bf16.mxu0 %v3852_v14  ;;  %v3868_v36 = vpack.c.bf16 %v186_v33, %v185_v32  ;;  %v4494_v40 = vld [vmem:[%s4314_s29 + $0x8] sm:$0xff]  ;;  %vm4502_vm2 = vmpackc.low %vm151_vm0, %vm151_vm0  ;;  %v4507_v51 = vld [vmem:[%s4314_s29 + $0x10] sm:$0xff]  ;;  %s4275_s7 = smov [#allocation2]  }
  0x3d   :  { %3861 = vmatprep.subr.bf16.mxu1 %v3860_v17  ;;  %v4510_v52 = vld [vmem:[%s4314_s29 + $0x18] sm:$0xff]  ;;  %v191_v6 = vld [vmem:[%s4299_s17] sm:$0xff]  ;;  %v192_v8 = vld [vmem:[%s4299_s17 + $0x8] sm:$0xff]  ;;  %s4897_s17 = sld [smem:[#allocation6_spill]]  ;;  %s4898_s29 = sld [smem:[#allocation11_spill]] }
  0x3e   :  { %156 = vadd.xlane.f32.xlu0 %v155_v5  ;;  %v142_v16 = vld [vmem:[%s4319_s3] sm:$0xff]  ;;  %v144_v18 = vld [vmem:[%s4319_s3 + $0x10] sm:$0xff]  ;;  %s3162_s10 = sshll.u32 %s4275_s7, 4  ;;  %s3163_s10 = int_to_ptr.vmem [resolvable:$true] %s3162_s10 }
  0x3f   :  { %3855 = vmatpush3.bf16.msra.mxu0 %v3852_v14  ;;  %s4214_s11 = scalar_lea.vmem %s3163_s10, 16  ;;  %s4218_s15 = scalar_lea.vmem %s3163_s10, 32 }
  0x40   :  { %3863 = vmatpush3.bf16.msra.mxu1 %v3860_v17  ;;  %3865 = vmatprep.subr.bf16.mxu0 %v3864_v20  ;;  %v143_v17 = vld [vmem:[%s4319_s3 + $0x8] sm:$0xff]  ;;  %p4215_p0 = scmp.ne.s32.totalorder %s3163_s10, %s4214_s11  ;;  %p4219_p1 = scmp.lt.s32.totalorder %s3163_s10, %s3163_s10 }
  0x41   :  { %3872 = vmatprep.subr.bf16.mxu1 %v4271_v37  ;;  %v4543_v19 = vpack.c.bf16 %v143_v17, %v142_v16  ;;  %v1194_v17 = vld [vmem:[%s4369_s4] sm:$0xff]  ;;  %p4220_p2 = scmp.lt.s32.totalorder %s4218_s15, %s4214_s11 }
  0x43   :  { %p4221_p3 = por %p4220_p2, %p4219_p1 }
  0x45   :  { %p4222_p4 = pnand %p4221_p3, %p4215_p0 }
  0xc7   :  { %v154_v21 = vpop.xlane.xlu0 %153 }
  0xc8   :  { %v159_v22 = vmul.f32 0.03125, %v154_v21 }
  0xca   :  { %v161_v23 = vadd.f32 1e-06, %v159_v22 }
  0xcb   :  { %v157_v24 = vpop.xlane.xlu0 %156 }
  0xcc   :  { %4152 = vrsqrt.f32 %v161_v23  ;;  %v160_v25 = vmul.f32 0.03125, %v157_v24 }
  0xce   :  { %v162_v26 = vadd.f32 1e-06, %v160_v25 }
  0xd0   :  { %4154 = vrsqrt.f32 %v162_v26 }
  0xd6   :  { %v4153_v27 = vpop.eup %4152 }
  0xd7   :  { %v165_v29 = vmul.f32 %v4153_v27, %v4452_v0 }
  0xd9   :  { %v173_v30 = vmul.f32 %v3205_v28, %v165_v29 }
  0xda   :  { %v4155_v31 = vpop.eup %4154 }
  0xdb   :  { %v166_v34 = vmul.f32 %v4155_v31, %v4455_v1  ;;  %3488 = vmatprep.mubr.msk.f32.mxu0 %vm151_vm0, %v173_v30  ;;  %3499 = vmatprep.mubr.msk.f32.mxu1 %vm151_vm0, %v173_v30 }
  0xdd   :  { %v174_v35 = vmul.f32 %v3205_v28, %v166_v34 }
  0xdf   :  { %3489 = vmatmul.mubr.msk.f32.vlgmr.msra.gmra.mrb[0].mxu0 %vm151_vm0, %v174_v35  ;;  %3500 = vmatmul.mubr.msk.f32.vlgmr.msra.gmra.mrb[0].mxu1 %vm151_vm0, %v174_v35 }
  0xe0   :  { %3867 = vmatpush3.bf16.msra.mxu0 %v3864_v20  ;;  %3510 = vmatprep.mubr.msk.f32.mxu0 %vm151_vm0, %v173_v30  ;;  %v145_v20 = vld [vmem:[%s4319_s3 + $0x18] sm:$0xff]  ;;  %s4899_s3 = sld [smem:[#allocation13_spill]] }
  0xe1   :  { %3869 = vmatprep.subr.bf16.mxu0 %v3868_v36  ;;  %3521 = vmatprep.mubr.msk.f32.mxu1 %vm4272_vm1, %v4273_v38  ;;  %v4546_v21 = vpack.c.bf16 %v145_v20, %v144_v18  ;;  %v1195_v18 = vld [vmem:[%s4369_s4 + $0x8] sm:$0xff] }
  0xe2   :  { %v3940_v20 = vpack.c.bf16 %v1195_v18, %v1194_v17 }
  0xe4   :  { %3871 = vmatpush3.bf16.msra.mxu0 %v3868_v36  ;;  %v187_v36 = vld [vmem:[%s4339_s24] sm:$0xff] }
  0xe5   :  { %3880 = vmatprep.subr.bf16.mxu0 %v4271_v37 }
  0xe7   :  { %3511 = vmatmul.mubr.msk.f32.vlgmr.msra.gmra.mrb[2].mxu0 %vm151_vm0, %v174_v35 }
  0xe8   :  { %3532 = vmatprep.mubr.msk.f32.mxu0 %vm4272_vm1, %v4273_v38 }
 0x1b2   :  { %v3490_v41 = vpop.f32.mrb[0].mxu0  ;;  %v3501_v42 = vpop.f32.mrb[0].mxu1 }
 0x1b3   :  { %v428_v43 = vmul.f32 %v3501_v42, %v4491_v39  ;;  %v429_v44 = vmul.f32 %v3501_v42, %v4494_v40  ;;  %v265_v45 = vpop.f32.mrb[1].mxu0  ;;  %v340_v46 = vpop.f32.mrb[1].mxu1  ;;  %v430_v54 = vmul.f32 %v3501_v42, %v4507_v51  ;;  %v431_v55 = vmul.f32 %v3501_v42, %v4510_v52 }
 0x1b4   :  { %v424_v47 = vmul.f32 %v340_v46, %v4491_v39  ;;  %v425_v48 = vmul.f32 %v340_v46, %v4494_v40  ;;  %v426_v56 = vmul.f32 %v340_v46, %v4507_v51  ;;  %v427_v57 = vmul.f32 %v340_v46, %v4510_v52 }
 0x1b5   :  { %v3881_v50 = vpack.c.bf16 %v429_v44, %v428_v43  ;;  %v3885_v60 = vpack.c.bf16 %v431_v55, %v430_v54 }
 0x1b6   :  { %v3873_v53 = vpack.c.bf16 %v425_v48, %v424_v47  ;;  %v3877_v61 = vpack.c.bf16 %v427_v57, %v426_v56  ;;  %v189_v47 = vld [vmem:[%s4339_s24 + $0x10] sm:$0xff]  ;;  %v190_v48 = vld [vmem:[%s4339_s24 + $0x18] sm:$0xff] }
 0x1b7   :  { %3883 = vmatpush3.bf16.xpose.msk.msra.mxu0 %vm4502_vm2, %v3881_v50  ;;  %v3912_v56 = vpack.c.bf16 %v190_v48, %v189_v47 }
 0x1b8   :  { %3875 = vmatpush3.bf16.xpose.msk.msra.mxu1 %vm4502_vm2, %v3873_v53  ;;  %3884 = vmatprep.subr.bf16.mxu0 %v4271_v37 }
 0x1b9   :  { %3876 = vmatprep.subr.bf16.mxu1 %v4271_v37 }
 0x1ba   :  { %v3512_v58 = vpop.f32.mrb[2].mxu0 }
 0x1bb   :  { %v415_v59 = vpop.f32.mrb[3].mxu0  ;;  %v436_v29 = vmul.f32 %v3512_v58, %v4491_v39  ;;  %v437_v30 = vmul.f32 %v3512_v58, %v4494_v40  ;;  %v438_v32 = vmul.f32 %v3512_v58, %v4507_v51  ;;  %v439_v33 = vmul.f32 %v3512_v58, %v4510_v52 }
 0x1bc   :  { %v432_v62 = vmul.f32 %v415_v59, %v4491_v39  ;;  %v433_v63 = vmul.f32 %v415_v59, %v4494_v40  ;;  %v434_v2 = vmul.f32 %v415_v59, %v4507_v51  ;;  %v435_v3 = vmul.f32 %v415_v59, %v4510_v52 }
 0x1bd   :  { %v3903_v34 = vpack.c.bf16 %v437_v30, %v436_v29  ;;  %v3906_v35 = vpack.c.bf16 %v439_v33, %v438_v32  ;;  %v972_v29 = vld [vmem:[%s4364_s27 + $0x28] sm:$0xff] }
 0x1be   :  { %v3897_v4 = vpack.c.bf16 %v433_v63, %v432_v62  ;;  %v3900_v5 = vpack.c.bf16 %v435_v3, %v434_v2  ;;  %v4571_v62 = vld [vmem:[%s4289_s9 + $0x8] sm:$0xff]  ;;  %v4577_v3 = vld [vmem:[%s4289_s9] sm:$0xff]  ;;  %s4896_s9 = sld [smem:[#allocation10_spill]] }
 0x1bf   :  { %3887 = vmatpush3.bf16.xpose.msk.msra.mxu0 %vm4502_vm2, %v3885_v60 }
 0x1c0   :  { %3879 = vmatpush3.bf16.xpose.msk.msra.mxu1 %vm4502_vm2, %v3877_v61  ;;  %3896 = vmatprep.subr.bf16.mxu0 %v4271_v37 }
 0x1c1   :  { %3889 = vmatprep.subr.bf16.mxu1 %v4543_v19 }
 0x1c4   :  { %v1203_v17 = vld [vmem:[%s4896_s9 + $0x8] sm:$0xff] }
 0x1c6   :  { %3533 = vmatmul.mubr.msk.f32.vlgmr.msra.gmra.mrb[4].mxu0 %vm151_vm0, %v3490_v41  ;;  %v188_v41 = vld [vmem:[%s4339_s24 + $0x8] sm:$0xff]  ;;  %s4903_s24 = sld [smem:[#allocation17_spill]] }
 0x1c7   :  { %3522 = vmatmul.mubr.msk.f32.vlgmr.msra.gmra.mrb[2].mxu1 %vm151_vm0, %v265_v45  ;;  %3898 = vmatpush3.bf16.msra.mxu0 %v3897_v4  ;;  %v3908_v42 = vpack.c.bf16 %v188_v41, %v187_v36 }
 0x1c8   :  { %3899 = vmatprep.subr.bf16.mxu0 %v4271_v37  ;;  %3554 = vmatprep.mubr.msk.f32.mxu0 %vm4272_vm1, %v4273_v38 }
 0x1c9   :  { %3891 = vmatpush3.bf16.msra.mxu1 %v4543_v19 }
 0x1ca   :  { %3893 = vmatprep.subr.bf16.mxu1 %v4546_v21 }
 0x1cb   :  { %3901 = vmatpush3.bf16.msra.mxu0 %v3900_v5 }
 0x1cc   :  { %3909 = vmatprep.subr.bf16.mxu0 %v3908_v42 }
 0x1cd   :  { %3895 = vmatpush3.bf16.msra.mxu1 %v4546_v21 }
 0x1ce   :  { %3902 = vmatprep.subr.bf16.mxu1 %v4271_v37 }
 0x299   :  { %v606_v7 = vpop.f32.mrb[4].mxu0 }
 0x29a   :  { %v521_v9 = vpop.f32.mrb[2].mxu1  ;;  %v3534_v10 = vpop.f32.mrb[5].mxu0  ;;  %v607_v13 = vadd.f32 %v606_v7, %v192_v8  ;;  %v1170_v7 = vmul.f32 %v4577_v3, %v4577_v3 }
 0x29b   :  { %v522_v11 = vadd.f32 %v521_v9, %v191_v6  ;;  %v3523_v12 = vpop.f32.mrb[3].mxu1  ;;  %v1171_v6 = vmul.f32 %v4571_v62, %v4571_v62 }
 0x29c   :  { %v613_v15 = vsel %vm151_vm0, %v607_v13, -inf  ;;  %v1172_v10 = vsel %vm151_vm0, %v1170_v7, 0.0  ;;  %v964_v12 = vld [vmem:[%s4359_s20 + $0x8] sm:$0xff] }
 0x29d   :  { %v610_v14 = vsel %vm151_vm0, %v522_v11, -inf }
 0x29e   :  { %611 = vmax.xlane.f32.xlu1 %v610_v14 }
 0x2a2   :  { %614 = vmax.xlane.f32.xlu1 %v613_v15  ;;  %v966_v15 = vld [vmem:[%s4359_s20 + $0x18] sm:$0xff] }
 0x32b   :  { %v612_v22 = vpop.xlane.xlu1 %611 }
 0x32c   :  { %v616_v23 = vsub.f32 %v522_v11, %v612_v22  ;;  %v963_v11 = vld [vmem:[%s4359_s20] sm:$0xff] }
 0x32d   :  { %v3916_v14 = vpack.c.bf16 %v964_v12, %v963_v11  ;;  %v967_v22 = vld [vmem:[%s4364_s27] sm:$0xff] }
 0x32e   :  { %v618_v24 = vmul.f32 1.442695, %v616_v23  ;;  %v968_v23 = vld [vmem:[%s4364_s27 + $0x8] sm:$0xff] }
 0x32f   :  { %v615_v25 = vpop.xlane.xlu1 %614 }
 0x330   :  { %4156 = vpow2.f32 %v618_v24  ;;  %v617_v26 = vsub.f32 %v607_v13, %v615_v25  ;;  %v965_v13 = vld [vmem:[%s4359_s20 + $0x10] sm:$0xff]  ;;  %v3924_v25 = vpack.c.bf16 %v968_v23, %v967_v22  ;;  %v1205_v23 = vld [vmem:[%s4896_s9 + $0x18] sm:$0xff]  ;;  %s4906_s20 = sld [smem:[#allocation20_spill]] }
 0x331   :  { %v3920_v16 = vpack.c.bf16 %v966_v15, %v965_v13  ;;  %v969_v24 = vld [vmem:[%s4364_s27 + $0x10] sm:$0xff] }
 0x332   :  { %v620_v27 = vmul.f32 1.442695, %v617_v26  ;;  %v970_v26 = vld [vmem:[%s4364_s27 + $0x18] sm:$0xff]  ;;  %v973_v13 = vld [vmem:[%s4364_s27 + $0x30] sm:$0xff] }
 0x333   :  { %v1204_v22 = vld [vmem:[%s4896_s9 + $0x10] sm:$0xff] }
 0x334   :  { %4158 = vpow2.f32 %v620_v27  ;;  %v3928_v27 = vpack.c.bf16 %v970_v26, %v969_v24 }
 0x33a   :  { %v4157_v28 = vpop.eup %4156 }
 0x33b   :  { %3543 = vmatprep.mubr.msk.f32.mxu1 %vm151_vm0, %v4157_v28 }
 0x33e   :  { %v4159_v31 = vpop.eup %4158 }
 0x33f   :  { %3544 = vmatmul.mubr.msk.f32.vlgmr.msra.gmra.mrb[4].mxu1 %vm151_vm0, %v4159_v31 }
 0x340   :  { %3904 = vmatpush3.bf16.msra.mxu1 %v3903_v34  ;;  %3565 = vmatprep.mubr.msk.f32.mxu1 %vm4272_vm1, %v4273_v38 }
 0x341   :  { %3905 = vmatprep.subr.bf16.mxu1 %v4271_v37 }
 0x344   :  { %3907 = vmatpush3.bf16.msra.mxu1 %v3906_v35 }
 0x345   :  { %3917 = vmatprep.subr.bf16.mxu1 %v3916_v14 }
 0x412   :  { %v3545_v43 = vpop.f32.mrb[4].mxu1 }
 0x413   :  { %v704_v44 = vmax.f32 %v3545_v43, 1e-30  ;;  %v694_v45 = vpop.f32.mrb[5].mxu1 }
 0x414   :  { %v703_v46 = vmax.f32 %v694_v45, 1e-30 }
 0x415   :  { %4160 = vrcp.f32 %v704_v44 }
 0x416   :  { %4162 = vrcp.f32 %v703_v46 }
 0x41f   :  { %v4161_v50 = vpop.eup %4160 }
 0x420   :  { %v4163_v53 = vpop.eup %4162  ;;  %v708_v54 = vmul.f32 %v4161_v50, %v4159_v31  ;;  %v3228_v50 = vld [vmem:[%s4349_s6] ss:$0 sm:$0xff]  ;;  %s4905_s6 = sld [smem:[#allocation15_spill]] }
 0x421   :  { %v706_v55 = vmul.f32 %v4163_v53, %v4157_v28  ;;  %v971_v28 = vld [vmem:[%s4364_s27 + $0x20] sm:$0xff] }
 0x422   :  { %3566 = vmatmul.mubr.msk.f32.vlgmr.msra.gmra.mrb[6].mxu1 %vm151_vm0, %v708_v54  ;;  %v3932_v30 = vpack.c.bf16 %v972_v29, %v971_v28 }
 0x423   :  { %3555 = vmatmul.mubr.msk.f32.vlgmr.msra.gmra.mrb[6].mxu0 %vm151_vm0, %v706_v55  ;;  %3919 = vmatpush3.bf16.msra.mxu1 %v3916_v14  ;;  %v1196_v55 = vld [vmem:[%s4369_s4 + $0x10] sm:$0xff]  ;;  %v974_v14 = vld [vmem:[%s4364_s27 + $0x38] sm:$0xff]  ;;  %s4907_s27 = sld [smem:[#allocation18_spill]] }
 0x424   :  { %3911 = vmatpush3.bf16.msra.mxu0 %v3908_v42  ;;  %3921 = vmatprep.subr.bf16.mxu1 %v3920_v16  ;;  %v3936_v15 = vpack.c.bf16 %v974_v14, %v973_v13 }
 0x425   :  { %3913 = vmatprep.subr.bf16.mxu0 %v3912_v56 }
 0x427   :  { %3923 = vmatpush3.bf16.msra.mxu1 %v3920_v16  ;;  %v1202_v16 = vld [vmem:[%s4896_s9] sm:$0xff] }
 0x428   :  { %3915 = vmatpush3.bf16.msra.mxu0 %v3912_v56  ;;  %3941 = vmatprep.subr.bf16.mxu1 %v3940_v20  ;;  %v1197_v56 = vld [vmem:[%s4369_s4 + $0x18] sm:$0xff]  ;;  %v3956_v18 = vpack.c.bf16 %v1203_v17, %v1202_v16 }
 0x429   :  { %3925 = vmatprep.subr.bf16.mxu0 %v3924_v25 }
 0x4f5   :  { %v851_v57 = vpop.f32.mrb[6].mxu1 }
 0x4f6   :  { %v778_v58 = vpop.f32.mrb[6].mxu0  ;;  %v3567_v59 = vpop.f32.mrb[7].mxu1 }
 0x4f7   :  { %v3556_v60 = vpop.f32.mrb[7].mxu0  ;;  %3576 = vmatprep.mubr.msk.f32.mxu0 %vm151_vm0, %v778_v58 }
 0x4f8   :  { %3577 = vmatmul.mubr.msk.f32.vlgmr.msra.gmra.mrb[8].mxu0 %vm151_vm0, %v851_v57 }
 0x4f9   :  { %3927 = vmatpush3.bf16.msra.mxu0 %v3924_v25 }
 0x4fa   :  { %3929 = vmatprep.subr.bf16.mxu0 %v3928_v27 }
 0x4fd   :  { %3931 = vmatpush3.bf16.msra.mxu0 %v3928_v27  ;;  %v3960_v27 = vpack.c.bf16 %v1205_v23, %v1204_v22 }
 0x4fe   :  { %3933 = vmatprep.subr.bf16.mxu0 %v3932_v30 }
 0x501   :  { %3935 = vmatpush3.bf16.msra.mxu0 %v3932_v30 }
 0x502   :  { %3937 = vmatprep.subr.bf16.mxu0 %v3936_v15 }
 0x505   :  { %3939 = vmatpush3.bf16.msra.mxu0 %v3936_v15 }
 0x506   :  { %3957 = vmatprep.subr.bf16.mxu0 %v3956_v18 }
 0x5cb   :  { %v3578_v61 = vpop.f32.mrb[8].mxu0 }
 0x5cc   :  { %v4574_v63 = vadd.f32 %v3578_v61, %v4455_v1  ;;  %v927_v2 = vpop.f32.mrb[9].mxu0  ;;  %v3944_v61 = vpack.c.bf16 %v1197_v56, %v1196_v55 }
 0x5cd   :  { %v4580_v4 = vadd.f32 %v927_v2, %v4452_v0  ;;  %v1175_v0 = vsel %vm151_vm0, %v1171_v6, 0.0  ;;  %v3234_v2 = vld [vmem:[%s4894_s0] ss:$0 sm:$0xff] }
 0x5ce   :  { %v940_v5 = vmul.f32 %v4574_v63, %v4574_v63  ;;  %v1198_v6 = vld [vmem:[%s4895_s5] sm:$0xff] }
 0x5cf   :  { %v939_v1 = vmul.f32 %v4580_v4, %v4580_v4 }
 0x5d0   :  { %v944_v8 = vsel %vm151_vm0, %v940_v5, 0.0 }
 0x5d1   :  { %945 = vadd.xlane.f32.xlu1 %v944_v8  ;;  %v941_v9 = vsel %vm151_vm0, %v939_v1, 0.0  ;;  %v1199_v1 = vld [vmem:[%s4895_s5 + $0x8] sm:$0xff] }
 0x5d2   :  { %942 = vadd.xlane.f32.xlu0 %v941_v9  ;;  %v3948_v9 = vpack.c.bf16 %v1199_v1, %v1198_v6 }
 0x5d5   :  { %1176 = vadd.xlane.f32.xlu1 %v1175_v0  ;;  %v1200_v0 = vld [vmem:[%s4895_s5 + $0x10] sm:$0xff] }
 0x5d6   :  { %1173 = vadd.xlane.f32.xlu0 %v1172_v10  ;;  %v1201_v10 = vld [vmem:[%s4895_s5 + $0x18] sm:$0xff] }
 0x5d7   :  { %v3952_v12 = vpack.c.bf16 %v1201_v10, %v1200_v0 }
 0x65e   :  { %v946_v31 = vpop.xlane.xlu1 %945 }
 0x65f   :  { %v948_v32 = vmul.f32 0.03125, %v946_v31  ;;  %v943_v33 = vpop.xlane.xlu0 %942 }
 0x660   :  { %v947_v34 = vmul.f32 0.03125, %v943_v33 }
 0x661   :  { %v950_v35 = vadd.f32 1e-06, %v948_v32 }
 0x662   :  { %v949_v36 = vadd.f32 1e-06, %v947_v34  ;;  %v1177_v41 = vpop.xlane.xlu1 %1176 }
 0x663   :  { %4164 = vrsqrt.f32 %v950_v35  ;;  %v1174_v42 = vpop.xlane.xlu0 %1173  ;;  %v1179_v43 = vmul.f32 0.03125, %v1177_v41 }
 0x664   :  { %4166 = vrsqrt.f32 %v949_v36  ;;  %v1178_v44 = vmul.f32 0.03125, %v1174_v42 }
 0x665   :  { %v1181_v45 = vadd.f32 1e-06, %v1179_v43 }
 0x666   :  { %v1180_v46 = vadd.f32 1e-06, %v1178_v44 }
 0x667   :  { %4168 = vrsqrt.f32 %v1181_v45 }
 0x668   :  { %4170 = vrsqrt.f32 %v1180_v46 }
 0x66d   :  { %v4165_v47 = vpop.eup %4164 }
 0x66e   :  { %v4167_v48 = vpop.eup %4166  ;;  %v954_v53 = vmul.f32 %v4165_v47, %v4574_v63 }
 0x66f   :  { %v953_v54 = vmul.f32 %v4167_v48, %v4580_v4 }
 0x670   :  { %v962_v60 = vmul.f32 %v3228_v50, %v954_v53 }
 0x671   :  { %v4169_v57 = vpop.eup %4168  ;;  %v961_v58 = vmul.f32 %v3228_v50, %v953_v54 }
 0x672   :  { %v4171_v59 = vpop.eup %4170  ;;  %v1185_v7 = vmul.f32 %v4169_v57, %v4571_v62 }
 0x673   :  { %3587 = vmatprep.mubr.msk.f32.mxu1 %vm151_vm0, %v961_v58  ;;  %v1184_v5 = vmul.f32 %v4171_v59, %v4577_v3 }
 0x674   :  { %3588 = vmatmul.mubr.msk.f32.vlgmr.msra.gmra.mrb[8].mxu1 %vm151_vm0, %v962_v60  ;;  %v1193_v11 = vmul.f32 %v3234_v2, %v1185_v7 }
 0x675   :  { %3943 = vmatpush3.bf16.msra.mxu1 %v3940_v20  ;;  %v1192_v8 = vmul.f32 %v3234_v2, %v1184_v5  ;;  %v1210_v5 = vld [vmem:[%s4897_s17] sm:$0xff] }
 0x676   :  { %3945 = vmatprep.subr.bf16.mxu1 %v3944_v61 }
 0x677   :  { %3617 = vmatprep.mubr.msk.f32.mxu1 %vm151_vm0, %v1192_v8 }
 0x679   :  { %3947 = vmatpush3.bf16.msra.mxu1 %v3944_v61  ;;  %v1211_v61 = vld [vmem:[%s4897_s17 + $0x8] sm:$0xff] }
 0x67a   :  { %3949 = vmatprep.subr.bf16.mxu1 %v3948_v9 }
 0x67c   :  { %3618 = vmatmul.mubr.msk.f32.vlgmr.msra.gmra.mrb[10].mxu1 %vm151_vm0, %v1193_v11 }
 0x67d   :  { %3951 = vmatpush3.bf16.msra.mxu1 %v3948_v9  ;;  %3628 = vmatprep.mubr.msk.f32.mxu1 %vm151_vm0, %v1192_v8 }
 0x67e   :  { %3953 = vmatprep.subr.bf16.mxu1 %v3952_v12 }
 0x681   :  { %3955 = vmatpush3.bf16.msra.mxu1 %v3952_v12 }
 0x682   :  { %3964 = vmatprep.subr.bf16.mxu1 %v4271_v37 }
 0x684   :  { %3629 = vmatmul.mubr.msk.f32.vlgmr.msra.gmra.mrb[12].mxu1 %vm151_vm0, %v1193_v11 }
 0x685   :  { %3650 = vmatprep.mubr.msk.f32.mxu1 %vm4272_vm1, %v4273_v38 }
 0x747   :  { %v3589_v20 = vpop.f32.mrb[8].mxu1 }
 0x748   :  { %v1047_v24 = vpop.f32.mrb[9].mxu1  ;;  %v1057_v26 = vmax.f32 %v3589_v20, 0.0 }
 0x749   :  { %v1056_v25 = vmax.f32 %v1047_v24, 0.0 }
 0x74b   :  { %3606 = vmatprep.mubr.msk.f32.mxu0 %vm1058_vm3, %v1056_v25 }
 0x74c   :  { %3607 = vmatmul.mubr.msk.f32.vlgmr.msra.gmra.mrb[10].mxu0 %vm1058_vm3, %v1057_v26 }
 0x74d   :  { %3959 = vmatpush3.bf16.msra.mxu0 %v3956_v18  ;;  %3639 = vmatprep.mubr.msk.f32.mxu0 %vm151_vm0, %v1192_v8 }
 0x74e   :  { %3961 = vmatprep.subr.bf16.mxu0 %v3960_v27 }
 0x74f   :  { %v3619_v28 = vpop.f32.mrb[10].mxu1 }
 0x750   :  { %v1284_v29 = vpop.f32.mrb[11].mxu1 }
 0x751   :  { %3963 = vmatpush3.bf16.msra.mxu0 %v3960_v27 }
 0x752   :  { %3972 = vmatprep.subr.bf16.mxu0 %v4271_v37 }
 0x754   :  { %3640 = vmatmul.mubr.msk.f32.vlgmr.msra.gmra.mrb[12].mxu0 %vm151_vm0, %v1193_v11 }
 0x755   :  { %3661 = vmatprep.mubr.msk.f32.mxu0 %vm4272_vm1, %v4273_v38 }
 0x757   :  { %v3630_v30 = vpop.f32.mrb[12].mxu1 }
 0x758   :  { %v1447_v31 = vmul.f32 %v3630_v30, %v4491_v39  ;;  %v1448_v32 = vmul.f32 %v3630_v30, %v4494_v40  ;;  %v1359_v33 = vpop.f32.mrb[13].mxu1  ;;  %v1449_v42 = vmul.f32 %v3630_v30, %v4507_v51  ;;  %v1450_v43 = vmul.f32 %v3630_v30, %v4510_v52 }
 0x759   :  { %v1443_v34 = vmul.f32 %v1359_v33, %v4491_v39  ;;  %v1444_v35 = vmul.f32 %v1359_v33, %v4494_v40  ;;  %v1445_v44 = vmul.f32 %v1359_v33, %v4507_v51  ;;  %v1446_v45 = vmul.f32 %v1359_v33, %v4510_v52 }
 0x75a   :  { %v3973_v36 = vpack.c.bf16 %v1448_v32, %v1447_v31  ;;  %v3977_v46 = vpack.c.bf16 %v1450_v43, %v1449_v42  ;;  %v1206_v31 = vld [vmem:[%s4898_s29] sm:$0xff]  ;;  %v1207_v32 = vld [vmem:[%s4898_s29 + $0x8] sm:$0xff]  ;;  %v1208_v42 = vld [vmem:[%s4898_s29 + $0x10] sm:$0xff] }
 0x75b   :  { %v3965_v41 = vpack.c.bf16 %v1444_v35, %v1443_v34  ;;  %v3969_v47 = vpack.c.bf16 %v1446_v45, %v1445_v44  ;;  %v4000_v33 = vpack.c.bf16 %v1207_v32, %v1206_v31  ;;  %v1209_v43 = vld [vmem:[%s4898_s29 + $0x18] sm:$0xff]  ;;  %v1984_v31 = vld [vmem:[%s4901_s14 + $0x10] sm:$0xff] }
 0x75c   :  { %3975 = vmatpush3.bf16.xpose.msk.msra.mxu0 %vm4502_vm2, %v3973_v36 }
 0x75d   :  { %3967 = vmatpush3.bf16.xpose.msk.msra.mxu1 %vm4502_vm2, %v3965_v41  ;;  %3976 = vmatprep.subr.bf16.mxu0 %v4271_v37 }
 0x75e   :  { %3968 = vmatprep.subr.bf16.mxu1 %v4271_v37 }
 0x764   :  { %3979 = vmatpush3.bf16.xpose.msk.msra.mxu0 %vm4502_vm2, %v3977_v46 }
 0x765   :  { %3971 = vmatpush3.bf16.xpose.msk.msra.mxu1 %vm4502_vm2, %v3969_v47  ;;  %3988 = vmatprep.subr.bf16.mxu0 %v4271_v37 }
 0x766   :  { %3981 = vmatprep.subr.bf16.mxu1 %v4543_v19 }
 0x76b   :  { %3662 = vmatmul.mubr.msk.f32.vlgmr.msra.gmra.mrb[14].mxu0 %vm151_vm0, %v3619_v28 }
 0x76c   :  { %3651 = vmatmul.mubr.msk.f32.vlgmr.msra.gmra.mrb[14].mxu1 %vm151_vm0, %v1284_v29  ;;  %3683 = vmatprep.mubr.msk.f32.mxu0 %vm4272_vm1, %v4273_v38 }
 0x76d   :  { %3983 = vmatpush3.bf16.msra.mxu1 %v4543_v19 }
 0x76e   :  { %3985 = vmatprep.subr.bf16.mxu1 %v4546_v21 }
 0x771   :  { %3987 = vmatpush3.bf16.msra.mxu1 %v4546_v21 }
 0x772   :  { %3994 = vmatprep.subr.bf16.mxu1 %v4271_v37 }
 0x81f   :  { %v3608_v48 = vpop.f32.mrb[10].mxu0 }
 0x820   :  { %v1131_v50 = vpop.f32.mrb[11].mxu0  ;;  %v4675_v2 = vadd.f32 %v3608_v48, %v4574_v63  ;;  %v4004_v48 = vpack.c.bf16 %v1209_v43, %v1208_v42 }
 0x821   :  { %v4679_v6 = vadd.f32 %v1131_v50, %v4580_v4  ;;  %v1986_v50 = vld [vmem:[%s4899_s3] sm:$0xff] }
 0x822   :  { %v1144_v12 = vmul.f32 %v4675_v2, %v4675_v2 }
 0x823   :  { %v1143_v63 = vmul.f32 %v4679_v6, %v4679_v6 }
 0x824   :  { %v1148_v4 = vsel %vm151_vm0, %v1144_v12, 0.0 }
 0x825   :  { %v1145_v14 = vsel %vm151_vm0, %v1143_v63, 0.0 }
 0x827   :  { %v3641_v53 = vpop.f32.mrb[12].mxu0 }
 0x828   :  { %v1434_v54 = vpop.f32.mrb[13].mxu0  ;;  %v1455_v23 = vmul.f32 %v3641_v53, %v4491_v39  ;;  %v1456_v24 = vmul.f32 %v3641_v53, %v4494_v40  ;;  %v1457_v27 = vmul.f32 %v3641_v53, %v4507_v51  ;;  %v1458_v28 = vmul.f32 %v3641_v53, %v4510_v52  ;;  %v1987_v53 = vld [vmem:[%s4899_s3 + $0x8] sm:$0xff] }
 0x829   :  { %v1451_v55 = vmul.f32 %v1434_v54, %v4491_v39  ;;  %v1452_v56 = vmul.f32 %v1434_v54, %v4494_v40  ;;  %v1453_v57 = vmul.f32 %v1434_v54, %v4507_v51  ;;  %v1454_v58 = vmul.f32 %v1434_v54, %v4510_v52 }
 0x82a   :  { %v3995_v29 = vpack.c.bf16 %v1456_v24, %v1455_v23  ;;  %v3998_v30 = vpack.c.bf16 %v1458_v28, %v1457_v27  ;;  %v4016_v54 = vpack.c.bf16 %v1987_v53, %v1986_v50  ;;  %v3257_v53 = vld [vmem:[%s4903_s24] ss:$0 sm:$0xff] }
 0x82b   :  { %v3989_v59 = vpack.c.bf16 %v1452_v56, %v1451_v55  ;;  %v3992_v60 = vpack.c.bf16 %v1454_v58, %v1453_v57 }
 0x82d   :  { %3990 = vmatpush3.bf16.msra.mxu0 %v3989_v59 }
 0x82e   :  { %3991 = vmatprep.subr.bf16.mxu0 %v4271_v37 }
 0x831   :  { %3993 = vmatpush3.bf16.msra.mxu0 %v3992_v60 }
 0x832   :  { %4001 = vmatprep.subr.bf16.mxu0 %v4000_v33 }
 0x83e   :  { %v1625_v1 = vpop.f32.mrb[14].mxu0 }
 0x83f   :  { %v1626_v7 = vadd.f32 %v1625_v1, %v1211_v61  ;;  %v1540_v8 = vpop.f32.mrb[14].mxu1  ;;  %v3663_v9 = vpop.f32.mrb[15].mxu0  ;;  %v1988_v1 = vld [vmem:[%s4899_s3 + $0x10] sm:$0xff] }
 0x840   :  { %v1541_v0 = vadd.f32 %v1540_v8, %v1210_v5  ;;  %v3652_v10 = vpop.f32.mrb[15].mxu1  ;;  %v3233_v8 = vld [vmem:[%s4900_s8] ss:$0 sm:$0xff] }
 0x841   :  { %v1632_v11 = vsel %vm151_vm0, %v1626_v7, -inf }
 0x842   :  { %1633 = vmax.xlane.f32.xlu1 %v1632_v11  ;;  %v1629_v13 = vsel %vm151_vm0, %v1541_v0, -inf }
 0x843   :  { %1630 = vmax.xlane.f32.xlu0 %v1629_v13 }
 0x846   :  { %1149 = vadd.xlane.f32.xlu1 %v1148_v4 }
 0x847   :  { %1146 = vadd.xlane.f32.xlu0 %v1145_v14 }
 0x8cf   :  { %v1634_v15 = vpop.xlane.xlu1 %1633 }
 0x8d0   :  { %v1636_v16 = vsub.f32 %v1626_v7, %v1634_v15  ;;  %v1631_v17 = vpop.xlane.xlu0 %1630  ;;  %v1989_v7 = vld [vmem:[%s4899_s3 + $0x18] sm:$0xff] }
 0x8d1   :  { %v1635_v18 = vsub.f32 %v1541_v0, %v1631_v17  ;;  %v4020_v11 = vpack.c.bf16 %v1989_v7, %v1988_v1 }
 0x8d2   :  { %v1639_v20 = vmul.f32 1.442695, %v1636_v16 }
 0x8d3   :  { %v1637_v22 = vmul.f32 1.442695, %v1635_v18  ;;  %v1150_v57 = vpop.xlane.xlu1 %1149 }
 0x8d4   :  { %v1147_v55 = vpop.xlane.xlu0 %1146  ;;  %v1152_v59 = vmul.f32 0.03125, %v1150_v57  ;;  %v1993_v57 = vld [vmem:[%s4902_s19 + $0x18] sm:$0xff] }
 0x8d5   :  { %4172 = vpow2.f32 %v1637_v22  ;;  %v1151_v56 = vmul.f32 0.03125, %v1147_v55 }
 0x8d6   :  { %4174 = vpow2.f32 %v1639_v20  ;;  %v1154_v60 = vadd.f32 1e-06, %v1152_v59 }
 0x8d7   :  { %v1153_v58 = vadd.f32 1e-06, %v1151_v56  ;;  %v1992_v56 = vld [vmem:[%s4902_s19 + $0x10] sm:$0xff] }
 0x8df   :  { %v4173_v25 = vpop.eup %4172 }
 0x8e0   :  { %v4175_v26 = vpop.eup %4174  ;;  %3672 = vmatprep.mubr.msk.f32.mxu1 %vm151_vm0, %v4173_v25 }
 0x8e1   :  { %3673 = vmatmul.mubr.msk.f32.vlgmr.msra.gmra.mrb[16].mxu1 %vm151_vm0, %v4175_v26 }
 0x8e2   :  { %3996 = vmatpush3.bf16.msra.mxu1 %v3995_v29  ;;  %3694 = vmatprep.mubr.msk.f32.mxu1 %vm4272_vm1, %v4273_v38  ;;  %v1982_v29 = vld [vmem:[%s4901_s14] sm:$0xff] }
 0x8e3   :  { %3997 = vmatprep.subr.bf16.mxu1 %v4271_v37 }
 0x8e6   :  { %3999 = vmatpush3.bf16.msra.mxu1 %v3998_v30  ;;  %v1983_v30 = vld [vmem:[%s4901_s14 + $0x8] sm:$0xff] }
 0x8e7   :  { %v4008_v32 = vpack.c.bf16 %v1983_v30, %v1982_v29 }
 0x8e9   :  { %4009 = vmatprep.subr.bf16.mxu1 %v4008_v32 }
 0x9b4   :  { %v3674_v34 = vpop.f32.mrb[16].mxu1 }
 0x9b5   :  { %v1723_v35 = vmax.f32 %v3674_v34, 1e-30  ;;  %v1713_v36 = vpop.f32.mrb[17].mxu1 }
 0x9b6   :  { %v1722_v41 = vmax.f32 %v1713_v36, 1e-30  ;;  %v1991_v36 = vld [vmem:[%s4902_s19 + $0x8] sm:$0xff] }
 0x9b7   :  { %4176 = vrcp.f32 %v1723_v35  ;;  %v1990_v35 = vld [vmem:[%s4902_s19] sm:$0xff] }
 0x9b8   :  { %4178 = vrcp.f32 %v1722_v41  ;;  %v4024_v41 = vpack.c.bf16 %v1991_v36, %v1990_v35 }
 0x9b9   :  { %4180 = vrsqrt.f32 %v1153_v58 }
 0x9ba   :  { %4182 = vrsqrt.f32 %v1154_v60  ;;  %v4028_v60 = vpack.c.bf16 %v1993_v57, %v1992_v56 }
 0x9c1   :  { %v4177_v44 = vpop.eup %4176 }
 0x9c2   :  { %v4179_v45 = vpop.eup %4178  ;;  %v1727_v46 = vmul.f32 %v4177_v44, %v4175_v26 }
 0x9c3   :  { %v1725_v47 = vmul.f32 %v4179_v45, %v4173_v25  ;;  %v4181_v61 = vpop.eup %4180 }
 0x9c4   :  { %3695 = vmatmul.mubr.msk.f32.vlgmr.msra.gmra.mrb[18].mxu1 %vm151_vm0, %v1727_v46  ;;  %v1157_v5 = vmul.f32 %v4181_v61, %v4679_v6  ;;  %v4183_v12 = vpop.eup %4182 }
 0x9c5   :  { %3684 = vmatmul.mubr.msk.f32.vlgmr.msra.gmra.mrb[16].mxu0 %vm151_vm0, %v1725_v47  ;;  %v1158_v6 = vmul.f32 %v4183_v12, %v4675_v2  ;;  %4011 = vmatpush3.bf16.msra.mxu1 %v4008_v32 }
 0x9c6   :  { %4003 = vmatpush3.bf16.msra.mxu0 %v4000_v33  ;;  %v4711_v63 = vmul.f32 %v3233_v8, %v1157_v5  ;;  %v1985_v33 = vld [vmem:[%s4901_s14 + $0x18] sm:$0xff] }
 0x9c7   :  { %4005 = vmatprep.subr.bf16.mxu0 %v4004_v48  ;;  %v4717_v4 = vmul.f32 %v3233_v8, %v1158_v6  ;;  %v4012_v34 = vpack.c.bf16 %v1985_v33, %v1984_v31 }
 0x9c9   :  { %4013 = vmatprep.subr.bf16.mxu1 %v4012_v34 }
 0x9ca   :  { %4007 = vmatpush3.bf16.msra.mxu0 %v4004_v48  ;;  %4015 = vmatpush3.bf16.msra.mxu1 %v4012_v34 }
 0x9cb   :  { %4017 = vmatprep.subr.bf16.mxu0 %v4016_v54  ;;  %4025 = vmatprep.subr.bf16.mxu1 %v4024_v41 }
 0xa97   :  { %v1870_v9 = vpop.f32.mrb[18].mxu1 }
 0xa98   :  { %v1797_v0 = vpop.f32.mrb[16].mxu0  ;;  %v3696_v10 = vpop.f32.mrb[19].mxu1 }
 0xa99   :  { %v3685_v13 = vpop.f32.mrb[17].mxu0  ;;  %3705 = vmatprep.mubr.msk.f32.mxu0 %vm151_vm0, %v1797_v0 }
 0xa9a   :  { %3706 = vmatmul.mubr.msk.f32.vlgmr.msra.gmra.mrb[18].mxu0 %vm151_vm0, %v1870_v9 }
 0xa9b   :  { %4019 = vmatpush3.bf16.msra.mxu0 %v4016_v54  ;;  %3727 = vmatprep.mubr.msk.f32.mxu0 %vm151_vm0, %v4711_v63 }
 0xa9c   :  { %4021 = vmatprep.subr.bf16.mxu0 %v4020_v11 }
 0xa9f   :  { %4023 = vmatpush3.bf16.msra.mxu0 %v4020_v11 }
 0xaa0   :  { %4032 = vmatprep.subr.bf16.mxu0 %v4271_v37 }
 0xaa2   :  { %3728 = vmatmul.mubr.msk.f32.vlgmr.msra.gmra.mrb[20].mxu0 %vm151_vm0, %v4717_v4 }
 0xaa3   :  { %3749 = vmatprep.mubr.msk.f32.mxu0 %vm4272_vm1, %v4273_v38 }
 0xb6d   :  { %v3707_v14 = vpop.f32.mrb[18].mxu0 }
 0xb6e   :  { %v4725_v15 = vadd.f32 %v3707_v14, %v4571_v62  ;;  %v1946_v16 = vpop.f32.mrb[19].mxu0  ;;  %v1999_v14 = vld [vmem:[%s4904_s30 + $0x8] sm:$0xff] }
 0xb6f   :  { %v4728_v17 = vadd.f32 %v1946_v16, %v4577_v3 }
 0xb70   :  { %v1959_v2 = vmul.f32 %v4725_v15, %v4725_v15 }
 0xb71   :  { %v1958_v18 = vmul.f32 %v4728_v17, %v4728_v17 }
 0xb72   :  { %v1963_v20 = vsel %vm151_vm0, %v1959_v2, 0.0 }
 0xb73   :  { %1964 = vadd.xlane.f32.xlu1 %v1963_v20  ;;  %v1960_v22 = vsel %vm151_vm0, %v1958_v18, 0.0 }
 0xb74   :  { %1961 = vadd.xlane.f32.xlu0 %v1960_v22 }
 0xb75   :  { %v3729_v62 = vpop.f32.mrb[20].mxu0 }
 0xb76   :  { %v2153_v23 = vpop.f32.mrb[21].mxu0  ;;  %v2241_v61 = vmul.f32 %v3729_v62, %v4491_v39  ;;  %v2242_v5 = vmul.f32 %v3729_v62, %v4494_v40  ;;  %v2243_v7 = vmul.f32 %v3729_v62, %v4507_v51  ;;  %v2244_v8 = vmul.f32 %v3729_v62, %v4510_v52 }
 0xb77   :  { %v2237_v3 = vmul.f32 %v2153_v23, %v4491_v39  ;;  %v2238_v24 = vmul.f32 %v2153_v23, %v4494_v40  ;;  %v2239_v26 = vmul.f32 %v2153_v23, %v4507_v51  ;;  %v2240_v27 = vmul.f32 %v2153_v23, %v4510_v52 }
 0xb78   :  { %v4041_v1 = vpack.c.bf16 %v2242_v5, %v2241_v61  ;;  %v4045_v9 = vpack.c.bf16 %v2244_v8, %v2243_v7 }
 0xb79   :  { %v4033_v25 = vpack.c.bf16 %v2238_v24, %v2237_v3  ;;  %v4037_v28 = vpack.c.bf16 %v2240_v27, %v2239_v26 }
 0xb7b   :  { %4035 = vmatpush3.bf16.xpose.msk.msra.mxu0 %vm4502_vm2, %v4033_v25 }
 0xb7c   :  { %4036 = vmatprep.subr.bf16.mxu0 %v4271_v37 }
 0xb83   :  { %4039 = vmatpush3.bf16.xpose.msk.msra.mxu0 %vm4502_vm2, %v4037_v28 }
 0xb84   :  { %4049 = vmatprep.subr.bf16.mxu0 %v4543_v19 }
 0xc00   :  { %v1965_v42 = vpop.xlane.xlu1 %1964 }
 0xc01   :  { %v1967_v43 = vmul.f32 0.03125, %v1965_v42  ;;  %v1962_v44 = vpop.xlane.xlu0 %1961 }
 0xc02   :  { %v1966_v45 = vmul.f32 0.03125, %v1962_v44 }
 0xc03   :  { %v1969_v46 = vadd.f32 1e-06, %v1967_v43 }
 0xc04   :  { %v1968_v47 = vadd.f32 1e-06, %v1966_v45  ;;  %v1996_v45 = vld [vmem:[%s4905_s6 + $0x10] sm:$0xff] }
 0xc05   :  { %4184 = vrsqrt.f32 %v1969_v46  ;;  %v1997_v46 = vld [vmem:[%s4905_s6 + $0x18] sm:$0xff] }
 0xc06   :  { %4186 = vrsqrt.f32 %v1968_v47 }
 0xc0f   :  { %v4185_v48 = vpop.eup %4184 }
 0xc10   :  { %v4187_v50 = vpop.eup %4186  ;;  %v1973_v54 = vmul.f32 %v4185_v48, %v4725_v15 }
 0xc11   :  { %v1972_v55 = vmul.f32 %v4187_v50, %v4728_v17 }
 0xc12   :  { %v1981_v59 = vmul.f32 %v3257_v53, %v1973_v54  ;;  %v4072_v54 = vpack.c.bf16 %v1997_v46, %v1996_v45  ;;  %v2980_v45 = vld [vmem:[%s4439_s25 + $0x8] sm:$0xff]  ;;  %v2981_v46 = vld [vmem:[%s4439_s25 + $0x10] sm:$0xff] }
 0xc13   :  { %v1980_v58 = vmul.f32 %v3257_v53, %v1972_v55 }
 0xc15   :  { %3716 = vmatprep.mubr.msk.f32.mxu1 %vm151_vm0, %v1980_v58 }
 0xc16   :  { %3717 = vmatmul.mubr.msk.f32.vlgmr.msra.gmra.mrb[20].mxu1 %vm151_vm0, %v1981_v59 }
 0xc17   :  { %4027 = vmatpush3.bf16.msra.mxu1 %v4024_v41  ;;  %3738 = vmatprep.mubr.msk.f32.mxu1 %vm151_vm0, %v4711_v63  ;;  %v1995_v41 = vld [vmem:[%s4905_s6 + $0x8] sm:$0xff] }
 0xc18   :  { %4029 = vmatprep.subr.bf16.mxu1 %v4028_v60 }
 0xc1b   :  { %4031 = vmatpush3.bf16.msra.mxu1 %v4028_v60 }
 0xc1c   :  { %4040 = vmatprep.subr.bf16.mxu1 %v4271_v37 }
 0xc1e   :  { %3739 = vmatmul.mubr.msk.f32.vlgmr.msra.gmra.mrb[22].mxu1 %vm151_vm0, %v4717_v4 }
 0xc1f   :  { %3760 = vmatprep.mubr.msk.f32.mxu1 %vm4272_vm1, %v4273_v38 }
 0xc24   :  { %4043 = vmatpush3.bf16.xpose.msk.msra.mxu1 %vm4502_vm2, %v4041_v1 }
 0xc25   :  { %4044 = vmatprep.subr.bf16.mxu1 %v4271_v37 }
 0xc2c   :  { %4047 = vmatpush3.bf16.xpose.msk.msra.mxu1 %vm4502_vm2, %v4045_v9  ;;  %v2778_v9 = vld [vmem:[%s4906_s20 + $0x10] sm:$0xff] }
 0xc2d   :  { %4056 = vmatprep.subr.bf16.mxu1 %v4271_v37 }
 0xce9   :  { %v3718_v0 = vpop.f32.mrb[20].mxu1 }
 0xcea   :  { %v2072_v10 = vpop.f32.mrb[21].mxu1  ;;  %3761 = vmatmul.mubr.msk.f32.vlgmr.msra.gmra.mrb[24].mxu1 %vm151_vm0, %v3718_v0 }
 0xceb   :  { %3750 = vmatmul.mubr.msk.f32.vlgmr.msra.gmra.mrb[22].mxu0 %vm151_vm0, %v2072_v10  ;;  %3782 = vmatprep.mubr.msk.f32.mxu1 %vm4272_vm1, %v4273_v38  ;;  %v2779_v10 = vld [vmem:[%s4906_s20 + $0x18] sm:$0xff] }
 0xcec   :  { %4051 = vmatpush3.bf16.msra.mxu0 %v4543_v19 }
 0xced   :  { %4053 = vmatprep.subr.bf16.mxu0 %v4546_v21 }
 0xcf0   :  { %4055 = vmatpush3.bf16.msra.mxu0 %v4546_v21  ;;  %v1998_v21 = vld [vmem:[%s4904_s30] sm:$0xff] }
 0xcf1   :  { %v3740_v49 = vpop.f32.mrb[22].mxu1  ;;  %4062 = vmatprep.subr.bf16.mxu0 %v4271_v37 }
 0xcf2   :  { %v2228_v11 = vpop.f32.mrb[23].mxu1  ;;  %v2249_v30 = vmul.f32 %v3740_v49, %v4491_v39  ;;  %v2250_v31 = vmul.f32 %v3740_v49, %v4494_v40  ;;  %v2251_v34 = vmul.f32 %v3740_v49, %v4507_v51  ;;  %v2252_v35 = vmul.f32 %v3740_v49, %v4510_v52 }
 0xcf3   :  { %v2245_v12 = vmul.f32 %v2228_v11, %v4491_v39  ;;  %v2246_v13 = vmul.f32 %v2228_v11, %v4494_v40  ;;  %v2247_v63 = vmul.f32 %v2228_v11, %v4507_v51  ;;  %v2248_v6 = vmul.f32 %v2228_v11, %v4510_v52  ;;  %v1994_v40 = vld [vmem:[%s4905_s6] sm:$0xff] }
 0xcf4   :  { %v4063_v36 = vpack.c.bf16 %v2250_v31, %v2249_v30  ;;  %v4066_v39 = vpack.c.bf16 %v2252_v35, %v2251_v34  ;;  %v4068_v51 = vpack.c.bf16 %v1995_v41, %v1994_v40  ;;  %v4080_v49 = vpack.c.bf16 %v2779_v10, %v2778_v9  ;;  %v2780_v11 = vld [vmem:[%s4434_s13] sm:$0xff]  ;;  %v2787_v30 = vld [vmem:[%s4434_s13 + $0x38] sm:$0xff] }
 0xcf5   :  { %v4057_v4 = vpack.c.bf16 %v2246_v13, %v2245_v12  ;;  %v4060_v19 = vpack.c.bf16 %v2248_v6, %v2247_v63  ;;  %v2781_v12 = vld [vmem:[%s4434_s13 + $0x8] sm:$0xff]  ;;  %v2782_v13 = vld [vmem:[%s4434_s13 + $0x10] sm:$0xff]  ;;  %v2783_v6 = vld [vmem:[%s4434_s13 + $0x18] sm:$0xff] }
 0xcf6   :  { %v4084_v63 = vpack.c.bf16 %v2781_v12, %v2780_v11 }
 0xcf7   :  { %4058 = vmatpush3.bf16.msra.mxu1 %v4057_v4  ;;  %v4088_v4 = vpack.c.bf16 %v2783_v6, %v2782_v13 }
 0xcf8   :  { %4059 = vmatprep.subr.bf16.mxu1 %v4271_v37 }
 0xcfb   :  { %4061 = vmatpush3.bf16.msra.mxu1 %v4060_v19  ;;  %v2784_v19 = vld [vmem:[%s4434_s13 + $0x20] sm:$0xff] }
 0xcfc   :  { %4069 = vmatprep.subr.bf16.mxu1 %v4068_v51 }
 0xdbd   :  { %v2419_v16 = vpop.f32.mrb[24].mxu1 }
 0xdbe   :  { %v2420_v2 = vadd.f32 %v2419_v16, %v1999_v14  ;;  %v2334_v18 = vpop.f32.mrb[22].mxu0  ;;  %v3762_v20 = vpop.f32.mrb[25].mxu1  ;;  %v2785_v14 = vld [vmem:[%s4434_s13 + $0x28] sm:$0xff] }
 0xdbf   :  { %v2335_v22 = vadd.f32 %v2334_v18, %v1998_v21  ;;  %v3751_v62 = vpop.f32.mrb[23].mxu0  ;;  %v4092_v21 = vpack.c.bf16 %v2785_v14, %v2784_v19 }
 0xdc0   :  { %v2426_v23 = vsel %vm151_vm0, %v2420_v2, -inf }
 0xdc1   :  { %2427 = vmax.xlane.f32.xlu1 %v2426_v23  ;;  %v2423_v3 = vsel %vm151_vm0, %v2335_v22, -inf }
 0xdc2   :  { %2424 = vmax.xlane.f32.xlu0 %v2423_v3 }
 0xe4e   :  { %v2428_v24 = vpop.xlane.xlu1 %2427 }
 0xe4f   :  { %v2430_v25 = vsub.f32 %v2420_v2, %v2428_v24  ;;  %v2425_v26 = vpop.xlane.xlu0 %2424  ;;  %v3280_v24 = vld [vmem:[%s4907_s27] ss:$0 sm:$0xff] }
 0xe50   :  { %v2429_v27 = vsub.f32 %v2335_v22, %v2425_v26 }
 0xe51   :  { %v2433_v28 = vmul.f32 1.442695, %v2430_v25 }
 0xe52   :  { %v2431_v29 = vmul.f32 1.442695, %v2429_v27 }
 0xe54   :  { %4188 = vpow2.f32 %v2431_v29  ;;  %v2786_v29 = vld [vmem:[%s4434_s13 + $0x30] sm:$0xff]  ;;  %s4908_s13 = sld [smem:[#allocation19_spill]] }
 0xe55   :  { %4190 = vpow2.f32 %v2433_v28  ;;  %v4096_v31 = vpack.c.bf16 %v2787_v30, %v2786_v29 }
 0xe5e   :  { %v4189_v32 = vpop.eup %4188 }
 0xe5f   :  { %v4191_v33 = vpop.eup %4190  ;;  %3771 = vmatprep.mubr.msk.f32.mxu0 %vm151_vm0, %v4189_v32 }
 0xe60   :  { %3772 = vmatmul.mubr.msk.f32.vlgmr.msra.gmra.mrb[24].mxu0 %vm151_vm0, %v4191_v33 }
 0xe61   :  { %4064 = vmatpush3.bf16.msra.mxu0 %v4063_v36  ;;  %3793 = vmatprep.mubr.msk.f32.mxu0 %vm4272_vm1, %v4273_v38 }
 0xe62   :  { %4065 = vmatprep.subr.bf16.mxu0 %v4271_v37 }
 0xe65   :  { %4067 = vmatpush3.bf16.msra.mxu0 %v4066_v39 }
 0xf33   :  { %v3773_v52 = vpop.f32.mrb[24].mxu0 }
 0xf34   :  { %v2517_v42 = vmax.f32 %v3773_v52, 1e-30  ;;  %v2507_v43 = vpop.f32.mrb[25].mxu0 }
 0xf35   :  { %v2516_v44 = vmax.f32 %v2507_v43, 1e-30 }
 0xf36   :  { %4192 = vrcp.f32 %v2517_v42 }
 0xf37   :  { %4194 = vrcp.f32 %v2516_v44  ;;  %v2979_v44 = vld [vmem:[%s4439_s25] sm:$0xff] }
 0xf40   :  { %v4193_v47 = vpop.eup %4192 }
 0xf41   :  { %v4195_v48 = vpop.eup %4194  ;;  %v2521_v50 = vmul.f32 %v4193_v47, %v4191_v33  ;;  %v4100_v47 = vpack.c.bf16 %v2980_v45, %v2979_v44 }
 0xf42   :  { %v2519_v53 = vmul.f32 %v4195_v48, %v4189_v32  ;;  %v2982_v48 = vld [vmem:[%s4439_s25 + $0x18] sm:$0xff]  ;;  %s4909_s25 = sld [smem:[#allocation5_spill]] }
 0xf43   :  { %3794 = vmatmul.mubr.msk.f32.vlgmr.msra.gmra.mrb[26].mxu0 %vm151_vm0, %v2521_v50  ;;  %v4104_v50 = vpack.c.bf16 %v2982_v48, %v2981_v46 }
 0xf44   :  { %3783 = vmatmul.mubr.msk.f32.vlgmr.msra.gmra.mrb[26].mxu1 %vm151_vm0, %v2519_v53 }
 0xf45   :  { %4071 = vmatpush3.bf16.msra.mxu1 %v4068_v51 }
 0xf46   :  { %4073 = vmatprep.subr.bf16.mxu1 %v4072_v54 }
 0xf48   :  { %v3067_v11 = vld [vmem:[%s4909_s25 + $0x8] sm:$0xff]  ;;  %v3066_v12 = vld [vmem:[%s4909_s25] sm:$0xff] }
 0xf49   :  { %4075 = vmatpush3.bf16.msra.mxu1 %v4072_v54  ;;  %vm3112_vm7 = vcmp.ne.s32.totalorder %v3067_v11, 4294967196  ;;  %vm3111_vm8 = vcmp.ne.s32.totalorder %v3066_v12, 4294967196 }
 0xf4a   :  { %4085 = vmatprep.subr.bf16.mxu1 %v4084_v63 }
0x1016   :  { %v2664_v37 = vpop.f32.mrb[26].mxu0 }
0x1017   :  { %v2591_v55 = vpop.f32.mrb[26].mxu1  ;;  %v3795_v56 = vpop.f32.mrb[27].mxu0 }
0x1018   :  { %v3784_v57 = vpop.f32.mrb[27].mxu1  ;;  %3804 = vmatprep.mubr.msk.f32.mxu1 %vm151_vm0, %v2591_v55 }
0x1019   :  { %3805 = vmatmul.mubr.msk.f32.vlgmr.msra.gmra.mrb[28].mxu1 %vm151_vm0, %v2664_v37 }
0x101a   :  { %4087 = vmatpush3.bf16.msra.mxu1 %v4084_v63 }
0x101b   :  { %4089 = vmatprep.subr.bf16.mxu1 %v4088_v4 }
0x101e   :  { %4091 = vmatpush3.bf16.msra.mxu1 %v4088_v4 }
0x101f   :  { %4093 = vmatprep.subr.bf16.mxu1 %v4092_v21 }
0x1022   :  { %4095 = vmatpush3.bf16.msra.mxu1 %v4092_v21 }
0x1023   :  { %4097 = vmatprep.subr.bf16.mxu1 %v4096_v31 }
0x1026   :  { %4099 = vmatpush3.bf16.msra.mxu1 %v4096_v31 }
0x10ec   :  { %v3806_v58 = vpop.f32.mrb[28].mxu1 }
0x10ed   :  { %v4811_v59 = vadd.f32 %v3806_v58, %v4725_v15  ;;  %v2740_v60 = vpop.f32.mrb[29].mxu1  ;;  %v2776_v15 = vld [vmem:[%s4906_s20] sm:$0xff] }
0x10ee   :  { %v4814_v61 = vadd.f32 %v2740_v60, %v4728_v17  ;;  %v2777_v17 = vld [vmem:[%s4906_s20 + $0x8] sm:$0xff]  ;;  %v3285_v60 = vld [vmem:[%s4908_s13] ss:$0 sm:$0xff] }
0x10ef   :  { %v2753_v5 = vmul.f32 %v4811_v59, %v4811_v59  ;;  %v4076_v0 = vpack.c.bf16 %v2777_v17, %v2776_v15  ;;  %v3068_v15 = vlaneseq }
0x10f0   :  { %v2752_v1 = vmul.f32 %v4814_v61, %v4814_v61 }
0x10f1   :  { %v2757_v7 = vsel %vm151_vm0, %v2753_v5, 0.0  ;;  %4077 = vmatprep.subr.bf16.mxu0 %v4076_v0  ;;  %v3069_v17 = vand.u32 127, %v3068_v15 }
0x10f2   :  { %2758 = vadd.xlane.f32.xlu1 %v2757_v7  ;;  %v2754_v8 = vsel %vm151_vm0, %v2752_v1, 0.0  ;;  %4079 = vmatpush3.bf16.msra.mxu0 %v4076_v0 }
0x10f3   :  { %2755 = vadd.xlane.f32.xlu0 %v2754_v8  ;;  %4081 = vmatprep.subr.bf16.mxu0 %v4080_v49  ;;  %v4274_v8 = vmov 0   ;;  %vm3070_vm4 = vcmp.lt.s32.totalorder %v3069_v17, 16 }
0x10f4   :  { %4151 = vset.pattern.permute.xlu1 %v4274_v8  ;;  %4150 = vset.pattern.permute.xlu0 %v4274_v8 }
0x10f6   :  { %4083 = vmatpush3.bf16.msra.mxu0 %v4080_v49 }
0x10f7   :  { %4101 = vmatprep.subr.bf16.mxu0 %v4100_v47 }
0x117f   :  { %v2759_v16 = vpop.xlane.xlu1 %2758 }
0x1180   :  { %v2761_v2 = vmul.f32 0.03125, %v2759_v16  ;;  %v2756_v18 = vpop.xlane.xlu0 %2755 }
0x1181   :  { %v2760_v20 = vmul.f32 0.03125, %v2756_v18 }
0x1182   :  { %v2763_v22 = vadd.f32 1e-06, %v2761_v2 }
0x1183   :  { %v2762_v62 = vadd.f32 1e-06, %v2760_v20 }
0x1184   :  { %4196 = vrsqrt.f32 %v2763_v22 }
0x1185   :  { %4198 = vrsqrt.f32 %v2762_v62 }
0x118e   :  { %v4197_v23 = vpop.eup %4196 }
0x118f   :  { %v4199_v3 = vpop.eup %4198  ;;  %v2767_v25 = vmul.f32 %v4197_v23, %v4811_v59 }
0x1190   :  { %v2766_v26 = vmul.f32 %v4199_v3, %v4814_v61 }
0x1191   :  { %v2775_v28 = vmul.f32 %v3280_v24, %v2767_v25 }
0x1192   :  { %v2774_v27 = vmul.f32 %v3280_v24, %v2766_v26 }
0x1194   :  { %3815 = vmatprep.mubr.msk.f32.mxu0 %vm151_vm0, %v2774_v27 }
0x1195   :  { %3816 = vmatmul.mubr.msk.f32.vlgmr.msra.gmra.mrb[28].mxu0 %vm151_vm0, %v2775_v28 }
0x1196   :  { %4103 = vmatpush3.bf16.msra.mxu0 %v4100_v47 }
0x1197   :  { %4105 = vmatprep.subr.bf16.mxu0 %v4104_v50 }
0x119a   :  { %4107 = vmatpush3.bf16.msra.mxu0 %v4104_v50 }
0x1268   :  { %v3817_v32 = vpop.f32.mrb[28].mxu0 }
0x1269   :  { %v2860_v33 = vpop.f32.mrb[29].mxu0  ;;  %v2870_v35 = vmax.f32 %v3817_v32, 0.0  ;;  %v3291_v32 = vsel %vm3112_vm7, 1.0, %v4273_v38 }
0x126a   :  { %v2869_v34 = vmax.f32 %v2860_v33, 0.0 }
0x126c   :  { %3834 = vmatprep.mubr.msk.f32.mxu1 %vm1058_vm3, %v2869_v34  ;;  %v3290_v34 = vsel %vm3111_vm8, 1.0, %v4273_v38 }
0x126d   :  { %3835 = vmatmul.mubr.msk.f32.vlgmr.msra.gmra.mrb[30].mxu1 %vm1058_vm3, %v2870_v35 }
0x1340   :  { %v3836_v36 = vpop.f32.mrb[30].mxu1 }
0x1341   :  { %v2953_v39 = vadd.f32 %v3836_v36, %v4811_v59  ;;  %v2943_v40 = vpop.f32.mrb[31].mxu1 }
0x1342   :  { %v2952_v41 = vadd.f32 %v2943_v40, %v4814_v61 }
0x1343   :  { %v2956_v51 = vmul.f32 %v2953_v39, %v2953_v39 }
0x1344   :  { %v2955_v52 = vmul.f32 %v2952_v41, %v2952_v41 }
0x1345   :  { %v2960_v42 = vsel %vm151_vm0, %v2956_v51, 0.0 }
0x1346   :  { %2961 = vadd.xlane.f32.xlu1 %v2960_v42  ;;  %v2957_v43 = vsel %vm151_vm0, %v2955_v52, 0.0  ;;  %v3135_v52 = vsel %vm3121_vm9, %v3290_v34, 0.0  ;;  %v3136_v42 = vsel %vm3121_vm9, %v3291_v32, 0.0 }
0x1347   :  { %2958 = vadd.xlane.f32.xlu0 %v2957_v43  ;;  %v3137_v44 = vadd.f32 %v3136_v42, %v3135_v52 }
0x13d3   :  { %v2962_v53 = vpop.xlane.xlu1 %2961 }
0x13d4   :  { %v2964_v54 = vmul.f32 0.03125, %v2962_v53  ;;  %v2959_v37 = vpop.xlane.xlu0 %2958 }
0x13d5   :  { %v2963_v55 = vmul.f32 0.03125, %v2959_v37 }
0x13d6   :  { %v2966_v56 = vadd.f32 1e-06, %v2964_v54 }
0x13d7   :  { %v2965_v57 = vadd.f32 1e-06, %v2963_v55 }
0x13d8   :  { %4200 = vrsqrt.f32 %v2966_v56 }
0x13d9   :  { %4202 = vrsqrt.f32 %v2965_v57 }
0x13e2   :  { %v4201_v58 = vpop.eup %4200 }
0x13e3   :  { %v4203_v59 = vpop.eup %4202  ;;  %v2970_v61 = vmul.f32 %v4201_v58, %v2953_v39 }
0x13e4   :  { %v2969_v5 = vmul.f32 %v4203_v59, %v2952_v41 }
0x13e5   :  { %v2978_v7 = vmul.f32 %v3285_v60, %v2970_v61 }
0x13e6   :  { %v2977_v1 = vmul.f32 %v3285_v60, %v2969_v5 }
0x13e8   :  { %3845 = vmatprep.mubr.msk.f32.mxu0 %vm151_vm0, %v2977_v1 }
0x13e9   :  { %3846 = vmatmul.mubr.msk.f32.vlgmr.msra.gmra.mrb[30].mxu0 %vm151_vm0, %v2978_v7 }
0x14bc   :  { %v3847_v9 = vpop.f32.mrb[30].mxu0 }
0x14bd   :  { %3065 = vst [vmem:[%s4444_s12 + $0x8] sm:$0xff] %v3847_v9  ;;  %v3055_v0 = vpop.f32.mrb[31].mxu0  ;;  %v3072_v10 = vsel %vm3070_vm4, %v3847_v9, -1e+09 }
0x14be   :  { %3064 = vst [vmem:[%s4444_s12] sm:$0xff] %v3055_v0  ;;  %3075 = vmax.xlane.f32.xlu1 %v3072_v10  ;;  %v3071_v49 = vsel %vm3070_vm4, %v3055_v0, -1e+09 }
0x14bf   :  { %3073 = vmax.xlane.f32.xlu0 %v3071_v49 }
0x14cf   :  { %3097 = vperm.xlu1 %4151, %v3067_v11  }
0x14d5   :  { %3094 = vperm.xlu0 %4150, %v3066_v12  }
0x154b   :  { %v3076_v13 = vpop.xlane.xlu1 %3075 }
0x154c   :  { %v3078_v63 = vsub.f32 %v3072_v10, %v3076_v13  ;;  %v3074_v6 = vpop.xlane.xlu0 %3073 }
0x154d   :  { %v3077_v4 = vsub.f32 %v3071_v49, %v3074_v6 }
0x154e   :  { %v3081_v19 = vmul.f32 1.442695, %v3078_v63 }
0x154f   :  { %v3079_v14 = vmul.f32 1.442695, %v3077_v4  ;;  %v3098_v16 = vpop.permute.xlu1 %3097 }
0x1550   :  { %4204 = vpow2.f32 %v3081_v19  ;;  %vm3100_vm6 = vcmp.eq.s32.totalorder %v3069_v17, %v3098_v16 }
0x1551   :  { %4206 = vpow2.f32 %v3079_v14  ;;  %v3289_v62 = vsel %vm3100_vm6, 1.0, %v4273_v38 }
0x1552   :  { %v3106_v23 = vmul.f32 %v3847_v9, %v3289_v62 }
0x1554   :  { %v3095_v21 = vpop.permute.xlu0 %3094 }
0x1555   :  { %vm3099_vm5 = vcmp.eq.s32.totalorder %v3069_v17, %v3095_v21 }
0x1556   :  { %v3288_v20 = vsel %vm3099_vm5, 1.0, %v4273_v38 }
0x1557   :  { %v3105_v22 = vmul.f32 %v3288_v20, %v3055_v0 }
0x155a   :  { %v4205_v2 = vpop.eup %4204 }
0x155b   :  { %v4207_v18 = vpop.eup %4206  ;;  %3085 = vadd.xlane.f32.xlu0 %v4205_v2 }
0x155c   :  { %3083 = vadd.xlane.f32.xlu1 %v4207_v18 }
0x1560   :  { %3107 = vadd.xlane.f32.xlu1 %v3105_v22 }
0x1564   :  { %3109 = vadd.xlane.f32.xlu1 %v3106_v23 }
0x15e8   :  { %v3086_v3 = vpop.xlane.xlu0 %3085 }
0x15e9   :  { %4208 = vlog2.f32 %v3086_v3  ;;  %v3084_v24 = vpop.xlane.xlu1 %3083 }
0x15ea   :  { %4210 = vlog2.f32 %v3084_v24 }
0x15ed   :  { %v3108_v25 = vpop.xlane.xlu1 %3107 }
0x15f1   :  { %v3110_v33 = vpop.xlane.xlu1 %3109 }
0x15f3   :  { %v4209_v26 = vpop.eup %4208 }
0x15f4   :  { %v4211_v27 = vpop.eup %4210  ;;  %v3090_v28 = vmul.f32 0.6931472, %v4209_v26 }
0x15f5   :  { %v3088_v29 = vmul.f32 0.6931472, %v4211_v27 }
0x15f6   :  { %v3092_v30 = vadd.f32 %v3090_v28, %v3076_v13 }
0x15f7   :  { %v3091_v31 = vadd.f32 %v3088_v29, %v3074_v6 }
0x15f8   :  { %v3118_v35 = vsub.f32 %v3092_v30, %v3110_v33 }
0x15f9   :  { %v3117_v36 = vsub.f32 %v3091_v31, %v3108_v25 }
0x15fa   :  { %v3120_v39 = vmul.f32 %v3291_v32, %v3118_v35 }
0x15fb   :  { %v3119_v40 = vmul.f32 %v3290_v34, %v3117_v36 }
0x15fc   :  { %v3123_v41 = vsel %vm3121_vm9, %v3120_v39, 0.0 }
0x15fd   :  { %v3122_v51 = vsel %vm3121_vm9, %v3119_v40, 0.0 }
0x15fe   :  { %v3124_v43 = vadd.f32 %v3123_v41, %v3122_v51 }
0x1600   :  { %3125 = vadd.xlane.f32.xlu1 %v3124_v43 }
0x1604   :  { %3138 = vadd.xlane.f32.xlu1 %v3137_v44 }
0x168d   :  { %v3126_v45 = vpop.xlane.xlu1 %3125 }
0x168e   :  { %v3127_v46 = vrot.slane %v3126_v45, 4 }
0x1690   :  { %v3128_v47 = vadd.f32 %v3127_v46, %v3126_v45 }
0x1691   :  { %v3139_v48 = vpop.xlane.xlu1 %3138 }
0x1692   :  { %v3129_v50 = vrot.slane %v3128_v47, 2  ;;  %v3140_v53 = vrot.slane %v3139_v48, 4 }
0x1694   :  { %v3141_v38 = vadd.f32 %v3140_v53, %v3139_v48  ;;  %v3130_v54 = vadd.f32 %v3129_v50, %v3128_v47 }
0x1696   :  { %v3142_v37 = vrot.slane %v3141_v38, 2  ;;  %v3131_v55 = vrot.slane %v3130_v54, 1 }
0x1698   :  { %v3143_v56 = vadd.f32 %v3142_v37, %v3141_v38  ;;  %v3132_v57 = vadd.f32 %v3131_v55, %v3130_v54 }
0x169a   :  { %4108 = vpush %v3132_v57  ;;  %v3144_v58 = vrot.slane %v3143_v56, 1 }
0x169c   :  { %v3145_v59 = vadd.f32 %v3144_v58, %v3143_v56 }
0x169e   :  { %4110 = vpush %v3145_v59 }
0x16cb   :  { %s4109_s12 = spop %4108 }
0x16cc   :  { %v3134_v1 = vstv %s4109_s12 }
0x16cf   :  { %s4111_s4 = spop %4110 }
0x16d0   :  { %v3147_v60 = vstv %s4111_s4 }
0x16d1   :  { %v3149_v61 = vmax.f32 %v3147_v60, 1.0  ;;  %vm3148_vm10 = vcmp.gt.f32.partialorder %v3147_v60, 0.0 }
0x16d3   :  { %4212 = vrcp.f32 %v3149_v61 }
0x16dd   :  { %v4213_v5 = vpop.eup %4212 }
0x16de   :  { %v3151_v7 = vmul.f32 %v4213_v5, %v3134_v1 }
0x16e0   :  { %v3152_v8 = vsel %vm3148_vm10, %v3151_v7, 0.0 }
0x16e1   :  { %3153 = vst [vmem:[#allocation2] sm:$0x1] %v3152_v8 }
0x16e2   :  { %4225 = shalt.err (!%p4222_p4)
}
0x16e3   :  { %s4226_s16 = scalar_lea.hbm %s4449_s21, 16 }
0x16e4   :  { %p4227_p5 = scmp.ne.s32.totalorder %s4449_s21, %s4226_s16  ;;  %p4230_p6 = scmp.lt.u32.totalorder %s4226_s16, %s4449_s21 }
0x16e6   :  { %p4232_p7 = pnand %p4230_p6, %p4227_p5 }
0x16e8   :  { %4235 = shalt.err (!%p4232_p7)
}
0x16e9   :  { %3165 = dma.vmem_to_hbm [thread:$0]  %s3163_s10, 16, %s4449_s21, [#allocation3]  }
0x16ea   :  { %4236 = dma.done.wait [#allocation3], 16  }
0x16eb   :  { %4237 = vsyncadd [#allocation3], 4294967280 }
0x16ec   :  { %3171 = vsyncpa [#allocation3], 1 }

</bundles_post_ra>
